<compile_context>
chip_gen: v6e
topology: v6e:2x2x1
jax: 0.10.0
libtpu: 0.0.40
codegen_flags: <defaults>
</compile_context>

<pallas_src>
import jax
import jax.numpy as jnp
from jax import lax
from jax.experimental import pallas as pl
from jax.experimental.pallas import tpu as pltpu


def _make_decoder_kernel(length: int, seq_len: int):
    """Fused greedy decoder. Ref order:
       onehot0, h0, c0, enc, emb, attn_We, attn_Wh, out_We, out_Wc,
       W_ih, W_hh, b_lstm, W_gen, b_gen, | outputs, h_out, c_out."""

    def kernel(onehot0_ref, h0_ref, c0_ref, enc_ref,
               emb_ref, attn_we_ref, attn_wh_ref, out_we_ref, out_wc_ref,
               w_ih_ref, w_hh_ref, b_lstm_ref, w_gen_ref, b_gen_ref,
               outputs_ref, h_out_ref, c_out_ref):
        f32, bf16 = jnp.float32, jnp.bfloat16
        B = onehot0_ref.shape[0]
        H = w_hh_ref.shape[0]
        V = emb_ref.shape[0]

        # ---- hoisted loads: one VMEM read per operand for the whole decode loop ----
        emb_w = emb_ref[...]            # (V, E)  bf16
        attn_we = attn_we_ref[...]      # (E, L)  bf16
        attn_wh = attn_wh_ref[...]      # (H, L)  bf16
        out_we = out_we_ref[...]        # (E, E)  bf16
        out_wc = out_wc_ref[...]        # (H, E)  bf16
        w_ih = w_ih_ref[...]            # (E, 4H) bf16
        w_hh = w_hh_ref[...]            # (H, 4H) bf16
        w_gen = w_gen_ref[...]          # (H, V)  bf16
        enc = enc_ref[...]              # (S, B, H) f32 (time-major, no transpose)

        # Hoisted bias broadcasts / iota (emitted once, not once per unrolled step).
        b_lstm = jnp.broadcast_to(b_lstm_ref[...], (B, 4 * H))
        b_gen = jnp.broadcast_to(b_gen_ref[...], (B, V))
        col = lax.broadcasted_iota(jnp.int32, (B, V), 1)

        # Initial embedding of current_input ids (one-hot matmul == gather).
        emb0 = jnp.dot(onehot0_ref[...], emb_w, preferred_element_type=f32)

        def step(t, carry):
            embedded, h, c = carry                 # f32: (B,E), (B,H), (B,H)
            emb_bf = embedded.astype(bf16)
            h_bf = h.astype(bf16)

            # --- attention: softmax over max_length, use first seq_len cols ---
            logits = (jnp.dot(emb_bf, attn_we, preferred_element_type=f32) +
                      jnp.dot(h_bf, attn_wh, preferred_element_type=f32))
            m = jnp.max(logits, axis=1, keepdims=True)
            p = jnp.exp(logits - m)
            aw = p / jnp.sum(p, axis=1, keepdims=True)           # (B, max_length)

            # context = bmm(aw[:, :seq_len], encoder_output.transpose(0,1))
            # encoder kept time-major (S,B,H): accumulate over timesteps directly
            # (no renormalization of the truncated weights, matching the module).
            context = aw[:, 0:1] * enc[0]
            for s in range(1, seq_len):
                context = context + aw[:, s:s + 1] * enc[s]      # (B, H) f32

            # rnn_input = relu(attn_out(cat(embedded, context)))  (no bias)
            rnn_in = (jnp.dot(emb_bf, out_we, preferred_element_type=f32) +
                      jnp.dot(context.astype(bf16), out_wc,
                              preferred_element_type=f32))
            rnn_in = jnp.maximum(rnn_in, 0.0)                     # (B, E)

            # --- 1-layer LSTM cell (PyTorch gate order i, f, g, o) ---
            gates = (jnp.dot(rnn_in.astype(bf16), w_ih,
                             preferred_element_type=f32) +
                     jnp.dot(h_bf, w_hh, preferred_element_type=f32) +
                     b_lstm)                                      # (B, 4H) lane-dense
            i_g = jax.nn.sigmoid(gates[:, 0 * H:1 * H])
            f_g = jax.nn.sigmoid(gates[:, 1 * H:2 * H])
            g_g = jnp.tanh(gates[:, 2 * H:3 * H])
            o_g = jax.nn.sigmoid(gates[:, 3 * H:4 * H])
            c_new = f_g * c + i_g * g_g
            h_new = o_g * jnp.tanh(c_new)

            # --- generator: Linear(H, vocab); lane-dense (B, V) store at step t ---
            scores = jnp.dot(h_new.astype(bf16), w_gen,
                             preferred_element_type=f32) + b_gen
            outputs_ref[t] = scores

            # --- greedy feedback: argmax -> one-hot -> embedding matmul ---
            mmax = jnp.max(scores, axis=1, keepdims=True)
            ids = jnp.min(jnp.where(scores == mmax, col, V), axis=1, keepdims=True)
            onehot = (col == ids).astype(bf16)
            emb_next = jnp.dot(onehot, emb_w, preferred_element_type=f32)
            return emb_next, h_new, c_new

        _, h_fin, c_fin = lax.fori_loop(0, length, step,
                                        (emb0, h0_ref[...], c0_ref[...]),
                                        unroll=True)
        h_out_ref[...] = h_fin
        c_out_ref[...] = c_fin

    return kernel


def init_decoder_params(key, vocab_size, emb_dim, hidden_size, max_length):
    """Deterministic synthetic parameters; Linear weights stored (in, out)."""
    ks = jax.random.split(key, 9)

    def unif(k, shape, fan_in):
        bound = 1.0 / (float(fan_in) ** 0.5)
        return jax.random.uniform(k, shape, jnp.float32, -bound, bound)

    d_cat = emb_dim + hidden_size
    return dict(
        emb=jax.random.normal(ks[0], (vocab_size, emb_dim), jnp.float32),
        attn_w=unif(ks[1], (d_cat, max_length), d_cat),        # attn (no bias)
        attn_out_w=unif(ks[2], (d_cat, emb_dim), d_cat),       # attn_out (no bias)
        w_ih=unif(ks[3], (emb_dim, 4 * hidden_size), hidden_size),
        w_hh=unif(ks[4], (hidden_size, 4 * hidden_size), hidden_size),
        b_lstm=(unif(ks[5], (1, 4 * hidden_size), hidden_size) +
                unif(ks[6], (1, 4 * hidden_size), hidden_size)),   # b_ih + b_hh
        w_gen=unif(ks[7], (hidden_size, vocab_size), hidden_size),
        b_gen=unif(ks[8], (1, vocab_size), hidden_size),
    )


def decoder_rnn_forward(current_input, hidden, length, encoder_output, params):
    """current_input: (B,) int32 ids; hidden: (h0, c0) each (1, B, H);
       encoder_output: (seq_len, B, H). Returns (outputs (length,B,V), (h, c))."""
    h0, c0 = hidden
    n_layers, batch, H = h0.shape
    assert n_layers == 1, "kernel models self.rnn as a 1-layer LSTM"
    seq_len = encoder_output.shape[0]
    vocab, E = params["emb"].shape
    max_length = params["attn_w"].shape[1]
    assert seq_len <= max_length
    assert encoder_output.shape[2] == H  # required by attn_out dims in the module

    bf16 = jnp.bfloat16
    # bf16 matmul operands (f32 accumulation happens inside the kernel).
    emb_bf = params["emb"].astype(bf16)
    attn_we = params["attn_w"][:E].astype(bf16)     # rows for `embedded`
    attn_wh = params["attn_w"][E:].astype(bf16)     # rows for `hidden`
    out_we = params["attn_out_w"][:E].astype(bf16)  # rows for `embedded`
    out_wc = params["attn_out_w"][E:].astype(bf16)  # rows for `context`
    w_ih = params["w_ih"].astype(bf16)
    w_hh = params["w_hh"].astype(bf16)
    w_gen = params["w_gen"].astype(bf16)

    onehot0 = jax.nn.one_hot(current_input, vocab, dtype=bf16)

    kernel = _make_decoder_kernel(length, seq_len)
    n_in = 14
    outputs, h_fin, c_fin = pl.pallas_call(
        kernel,
        out_shape=(jax.ShapeDtypeStruct((length, batch, vocab), jnp.float32),
                   jax.ShapeDtypeStruct((batch, H), jnp.float32),
                   jax.ShapeDtypeStruct((batch, H), jnp.float32)),
        in_specs=[pl.BlockSpec(memory_space=pltpu.MemorySpace.VMEM)] * n_in,
        out_specs=(pl.BlockSpec(memory_space=pltpu.MemorySpace.VMEM),) * 3,
    )(onehot0, h0[0], c0[0], encoder_output.astype(jnp.float32),
      emb_bf, attn_we, attn_wh, out_we, out_wc,
      w_ih, w_hh, params["b_lstm"], w_gen, params["b_gen"])
    return outputs, (h_fin[None], c_fin[None])


def _reference_forward(current_input, hidden, length, encoder_output, params):
    """Pure-JAX reference mirroring the PyTorch forward (same bf16 operand casts)."""
    bf16, f32 = jnp.bfloat16, jnp.float32
    h, c = hidden[0][0], hidden[1][0]
    seq_len, batch, H = encoder_output.shape
    vocab, E = params["emb"].shape
    emb = params["emb"].astype(bf16)
    attn_w = params["attn_w"].astype(bf16)
    out_w = params["attn_out_w"].astype(bf16)
    w_ih = params["w_ih"].astype(bf16)
    w_hh = params["w_hh"].astype(bf16)
    w_gen = params["w_gen"].astype(bf16)
    b_lstm, b_gen = params["b_lstm"], params["b_gen"]

    embedded = jnp.dot(jax.nn.one_hot(current_input, vocab, dtype=bf16), emb,
                       preferred_element_type=f32)
    outs = []
    for _ in range(length):
        x = jnp.concatenate([embedded.astype(bf16), h.astype(bf16)], axis=1)
        logits = jnp.dot(x, attn_w, preferred_element_type=f32)
        aw = jax.nn.softmax(logits, axis=1)
        context = jnp.einsum('bs,sbh->bh', aw[:, :seq_len], encoder_output)
        xo = jnp.concatenate([embedded.astype(bf16), context.astype(bf16)], axis=1)
        rnn_in = jnp.maximum(jnp.dot(xo, out_w, preferred_element_type=f32), 0.0)
        gates = (jnp.dot(rnn_in.astype(bf16), w_ih, preferred_element_type=f32) +
                 jnp.dot(h.astype(bf16), w_hh, preferred_element_type=f32) + b_lstm)
        i_g = jax.nn.sigmoid(gates[:, :H])
        f_g = jax.nn.sigmoid(gates[:, H:2 * H])
        g_g = jnp.tanh(gates[:, 2 * H:3 * H])
        o_g = jax.nn.sigmoid(gates[:, 3 * H:])
        c = f_g * c + i_g * g_g
        h = o_g * jnp.tanh(c)
        scores = jnp.dot(h.astype(bf16), w_gen, preferred_element_type=f32) + b_gen
        outs.append(scores)
        ids = jnp.argmax(scores, axis=1)
        embedded = jnp.dot(jax.nn.one_hot(ids, vocab, dtype=bf16), emb,
                           preferred_element_type=f32)
    return jnp.stack(outs), (h[None], c[None])


if __name__ == "__main__":
    # Small shapes consistent with the module (enc hidden must equal hidden_size).
    vocab_size = 128
    emb_dim = 32
    hidden_size = 32
    max_length = 10
    seq_len = 7           # shorter than max_length: exercises the [:, :seq_len] slice
    batch = 4
    decode_len = 5

    key = jax.random.PRNGKey(0)
    k_par, k_enc, k_h, k_c, k_tok = jax.random.split(key, 5)

    params = init_decoder_params(k_par, vocab_size, emb_dim, hidden_size, max_length)
    encoder_output = jax.random.normal(k_enc, (seq_len, batch, hidden_size), jnp.float32)
    h0 = 0.1 * jax.random.normal(k_h, (1, batch, hidden_size), jnp.float32)
    c0 = 0.1 * jax.random.normal(k_c, (1, batch, hidden_size), jnp.float32)
    current_input = jax.random.randint(k_tok, (batch,), 0, vocab_size, jnp.int32)

    outputs, (h_fin, c_fin) = decoder_rnn_forward(
        current_input, (h0, c0), decode_len, encoder_output, params)
    outputs = jax.block_until_ready(outputs)

    out_ref, (h_ref, c_ref) = _reference_forward(
        current_input, (h0, c0), decode_len, encoder_output, params)

    assert outputs.shape == (decode_len, batch, vocab_size)
    assert h_fin.shape == (1, batch, hidden_size)
    assert jnp.allclose(outputs, out_ref, atol=2e-3, rtol=2e-3)
    assert jnp.allclose(h_fin, h_ref, atol=2e-3, rtol=2e-3)
    assert jnp.allclose(c_fin, c_ref, atol=2e-3, rtol=2e-3)

    print("KERNEL_OK")
</pallas_src>

<mosaic_0001>
module attributes {stable_mosaic.version = 11 : i64} {
  func.func @kernel(%arg0: memref<4x128xbf16, #tpu.memory_space<vmem>>, %arg1: memref<4x32xf32, #tpu.memory_space<vmem>>, %arg2: memref<4x32xf32, #tpu.memory_space<vmem>>, %arg3: memref<7x4x32xf32, #tpu.memory_space<vmem>>, %arg4: memref<128x32xbf16, #tpu.memory_space<vmem>>, %arg5: memref<32x10xbf16, #tpu.memory_space<vmem>>, %arg6: memref<32x10xbf16, #tpu.memory_space<vmem>>, %arg7: memref<32x32xbf16, #tpu.memory_space<vmem>>, %arg8: memref<32x32xbf16, #tpu.memory_space<vmem>>, %arg9: memref<32x128xbf16, #tpu.memory_space<vmem>>, %arg10: memref<32x128xbf16, #tpu.memory_space<vmem>>, %arg11: memref<1x128xf32, #tpu.memory_space<vmem>>, %arg12: memref<32x128xbf16, #tpu.memory_space<vmem>>, %arg13: memref<1x128xf32, #tpu.memory_space<vmem>>, %arg14: memref<5x4x128xf32, #tpu.memory_space<vmem>>, %arg15: memref<4x32xf32, #tpu.memory_space<vmem>>, %arg16: memref<4x32xf32, #tpu.memory_space<vmem>>) attributes {dimension_semantics = [], scalar_prefetch = 0 : i64, scratch_operands = 0 : i64, tpu.core_type = #tpu.core_type<tc>} {
    %c0 = arith.constant 0 : index
    %c0_0 = arith.constant 0 : index
    %0 = vector.load %arg4[%c0, %c0_0] : memref<128x32xbf16, #tpu.memory_space<vmem>>, vector<128x32xbf16>
    %c0_1 = arith.constant 0 : index
    %c0_2 = arith.constant 0 : index
    %1 = vector.load %arg5[%c0_1, %c0_2] : memref<32x10xbf16, #tpu.memory_space<vmem>>, vector<32x10xbf16>
    %c0_3 = arith.constant 0 : index
    %c0_4 = arith.constant 0 : index
    %2 = vector.load %arg6[%c0_3, %c0_4] : memref<32x10xbf16, #tpu.memory_space<vmem>>, vector<32x10xbf16>
    %c0_5 = arith.constant 0 : index
    %c0_6 = arith.constant 0 : index
    %3 = vector.load %arg7[%c0_5, %c0_6] : memref<32x32xbf16, #tpu.memory_space<vmem>>, vector<32x32xbf16>
    %c0_7 = arith.constant 0 : index
    %c0_8 = arith.constant 0 : index
    %4 = vector.load %arg8[%c0_7, %c0_8] : memref<32x32xbf16, #tpu.memory_space<vmem>>, vector<32x32xbf16>
    %c0_9 = arith.constant 0 : index
    %c0_10 = arith.constant 0 : index
    %5 = vector.load %arg9[%c0_9, %c0_10] : memref<32x128xbf16, #tpu.memory_space<vmem>>, vector<32x128xbf16>
    %c0_11 = arith.constant 0 : index
    %c0_12 = arith.constant 0 : index
    %6 = vector.load %arg10[%c0_11, %c0_12] : memref<32x128xbf16, #tpu.memory_space<vmem>>, vector<32x128xbf16>
    %c0_13 = arith.constant 0 : index
    %c0_14 = arith.constant 0 : index
    %7 = vector.load %arg12[%c0_13, %c0_14] : memref<32x128xbf16, #tpu.memory_space<vmem>>, vector<32x128xbf16>
    %c0_15 = arith.constant 0 : index
    %c0_16 = arith.constant 0 : index
    %c0_17 = arith.constant 0 : index
    %8 = vector.load %arg3[%c0_15, %c0_16, %c0_17] : memref<7x4x32xf32, #tpu.memory_space<vmem>>, vector<7x4x32xf32>
    %c0_18 = arith.constant 0 : index
    %c0_19 = arith.constant 0 : index
    %9 = vector.load %arg11[%c0_18, %c0_19] : memref<1x128xf32, #tpu.memory_space<vmem>>, vector<1x128xf32>
    %10 = vector.shape_cast %9 : vector<1x128xf32> to vector<1x128xf32>
    %11 = vector.broadcast %10 : vector<1x128xf32> to vector<4x128xf32>
    %c0_20 = arith.constant 0 : index
    %c0_21 = arith.constant 0 : index
    %12 = vector.load %arg13[%c0_20, %c0_21] : memref<1x128xf32, #tpu.memory_space<vmem>>, vector<1x128xf32>
    %13 = vector.shape_cast %12 : vector<1x128xf32> to vector<1x128xf32>
    %14 = vector.broadcast %13 : vector<1x128xf32> to vector<4x128xf32>
    %15 = tpu.iota {dimensions = array<i32: 1>} : vector<4x128xi32>
    %c0_22 = arith.constant 0 : index
    %c0_23 = arith.constant 0 : index
    %16 = vector.load %arg0[%c0_22, %c0_23] : memref<4x128xbf16, #tpu.memory_space<vmem>>, vector<4x128xbf16>
    %cst = arith.constant dense<0.000000e+00> : vector<4x32xf32>
    %17 = tpu.matmul %16, %0, %cst {dimension_numbers = #tpu.dot_dimension_numbers<[1], [0], [0], [1], [0, 0, 1, 1], [], []>} : vector<4x128xbf16>, vector<128x32xbf16>, vector<4x32xf32> -> vector<4x32xf32>
    %c0_24 = arith.constant 0 : index
    %c0_25 = arith.constant 0 : index
    %18 = vector.load %arg1[%c0_24, %c0_25] : memref<4x32xf32, #tpu.memory_space<vmem>>, vector<4x32xf32>
    %c0_26 = arith.constant 0 : index
    %c0_27 = arith.constant 0 : index
    %19 = vector.load %arg2[%c0_26, %c0_27] : memref<4x32xf32, #tpu.memory_space<vmem>>, vector<4x32xf32>
    %c0_i32 = arith.constant 0 : i32
    %20 = arith.truncf %17 : vector<4x32xf32> to vector<4x32xbf16>
    %21 = arith.truncf %18 : vector<4x32xf32> to vector<4x32xbf16>
    %cst_28 = arith.constant dense<0.000000e+00> : vector<4x10xf32>
    %22 = tpu.matmul %20, %1, %cst_28 {dimension_numbers = #tpu.dot_dimension_numbers<[1], [0], [0], [1], [0, 0, 1, 1], [], []>} : vector<4x32xbf16>, vector<32x10xbf16>, vector<4x10xf32> -> vector<4x10xf32>
    %cst_29 = arith.constant dense<0.000000e+00> : vector<4x10xf32>
    %23 = tpu.matmul %21, %2, %cst_29 {dimension_numbers = #tpu.dot_dimension_numbers<[1], [0], [0], [1], [0, 0, 1, 1], [], []>} : vector<4x32xbf16>, vector<32x10xbf16>, vector<4x10xf32> -> vector<4x10xf32>
    %24 = arith.addf %22, %23 : vector<4x10xf32>
    %cst_30 = arith.constant dense<0xFF800000> : vector<4xf32>
    %25 = vector.multi_reduction <maximumf>, %24, %cst_30 [1] : vector<4x10xf32> to vector<4xf32>
    %26 = vector.shape_cast %25 : vector<4xf32> to vector<4x1xf32>
    %27 = vector.broadcast %26 : vector<4x1xf32> to vector<4x10xf32>
    %28 = arith.subf %24, %27 : vector<4x10xf32>
    %29 = math.exp %28 : vector<4x10xf32>
    %cst_31 = arith.constant dense<0.000000e+00> : vector<4xf32>
    %30 = vector.multi_reduction <add>, %29, %cst_31 [1] : vector<4x10xf32> to vector<4xf32>
    %31 = vector.shape_cast %30 : vector<4xf32> to vector<4x1xf32>
    %32 = vector.broadcast %31 : vector<4x1xf32> to vector<4x10xf32>
    %33 = arith.divf %29, %32 : vector<4x10xf32>
    %34 = vector.extract_strided_slice %33 {offsets = [0, 0], sizes = [4, 1], strides = [1, 1]} : vector<4x10xf32> to vector<4x1xf32>
    %35 = vector.extract_strided_slice %8 {offsets = [0, 0, 0], sizes = [1, 4, 32], strides = [1, 1, 1]} : vector<7x4x32xf32> to vector<1x4x32xf32>
    %36 = vector.shape_cast %35 : vector<1x4x32xf32> to vector<4x32xf32>
    %37 = vector.broadcast %34 : vector<4x1xf32> to vector<4x32xf32>
    %38 = arith.mulf %37, %36 : vector<4x32xf32>
    %39 = vector.extract_strided_slice %33 {offsets = [0, 1], sizes = [4, 1], strides = [1, 1]} : vector<4x10xf32> to vector<4x1xf32>
    %40 = vector.extract_strided_slice %8 {offsets = [1, 0, 0], sizes = [1, 4, 32], strides = [1, 1, 1]} : vector<7x4x32xf32> to vector<1x4x32xf32>
    %41 = vector.shape_cast %40 : vector<1x4x32xf32> to vector<4x32xf32>
    %42 = vector.broadcast %39 : vector<4x1xf32> to vector<4x32xf32>
    %43 = arith.mulf %42, %41 : vector<4x32xf32>
    %44 = arith.addf %38, %43 : vector<4x32xf32>
    %45 = vector.extract_strided_slice %33 {offsets = [0, 2], sizes = [4, 1], strides = [1, 1]} : vector<4x10xf32> to vector<4x1xf32>
    %46 = vector.extract_strided_slice %8 {offsets = [2, 0, 0], sizes = [1, 4, 32], strides = [1, 1, 1]} : vector<7x4x32xf32> to vector<1x4x32xf32>
    %47 = vector.shape_cast %46 : vector<1x4x32xf32> to vector<4x32xf32>
    %48 = vector.broadcast %45 : vector<4x1xf32> to vector<4x32xf32>
    %49 = arith.mulf %48, %47 : vector<4x32xf32>
    %50 = arith.addf %44, %49 : vector<4x32xf32>
    %51 = vector.extract_strided_slice %33 {offsets = [0, 3], sizes = [4, 1], strides = [1, 1]} : vector<4x10xf32> to vector<4x1xf32>
    %52 = vector.extract_strided_slice %8 {offsets = [3, 0, 0], sizes = [1, 4, 32], strides = [1, 1, 1]} : vector<7x4x32xf32> to vector<1x4x32xf32>
    %53 = vector.shape_cast %52 : vector<1x4x32xf32> to vector<4x32xf32>
    %54 = vector.broadcast %51 : vector<4x1xf32> to vector<4x32xf32>
    %55 = arith.mulf %54, %53 : vector<4x32xf32>
    %56 = arith.addf %50, %55 : vector<4x32xf32>
    %57 = vector.extract_strided_slice %33 {offsets = [0, 4], sizes = [4, 1], strides = [1, 1]} : vector<4x10xf32> to vector<4x1xf32>
    %58 = vector.extract_strided_slice %8 {offsets = [4, 0, 0], sizes = [1, 4, 32], strides = [1, 1, 1]} : vector<7x4x32xf32> to vector<1x4x32xf32>
    %59 = vector.shape_cast %58 : vector<1x4x32xf32> to vector<4x32xf32>
    %60 = vector.broadcast %57 : vector<4x1xf32> to vector<4x32xf32>
    %61 = arith.mulf %60, %59 : vector<4x32xf32>
    %62 = arith.addf %56, %61 : vector<4x32xf32>
    %63 = vector.extract_strided_slice %33 {offsets = [0, 5], sizes = [4, 1], strides = [1, 1]} : vector<4x10xf32> to vector<4x1xf32>
    %64 = vector.extract_strided_slice %8 {offsets = [5, 0, 0], sizes = [1, 4, 32], strides = [1, 1, 1]} : vector<7x4x32xf32> to vector<1x4x32xf32>
    %65 = vector.shape_cast %64 : vector<1x4x32xf32> to vector<4x32xf32>
    %66 = vector.broadcast %63 : vector<4x1xf32> to vector<4x32xf32>
    %67 = arith.mulf %66, %65 : vector<4x32xf32>
    %68 = arith.addf %62, %67 : vector<4x32xf32>
    %69 = vector.extract_strided_slice %33 {offsets = [0, 6], sizes = [4, 1], strides = [1, 1]} : vector<4x10xf32> to vector<4x1xf32>
    %70 = vector.extract_strided_slice %8 {offsets = [6, 0, 0], sizes = [1, 4, 32], strides = [1, 1, 1]} : vector<7x4x32xf32> to vector<1x4x32xf32>
    %71 = vector.shape_cast %70 : vector<1x4x32xf32> to vector<4x32xf32>
    %72 = vector.broadcast %69 : vector<4x1xf32> to vector<4x32xf32>
    %73 = arith.mulf %72, %71 : vector<4x32xf32>
    %74 = arith.addf %68, %73 : vector<4x32xf32>
    %cst_32 = arith.constant dense<0.000000e+00> : vector<4x32xf32>
    %75 = tpu.matmul %20, %3, %cst_32 {dimension_numbers = #tpu.dot_dimension_numbers<[1], [0], [0], [1], [0, 0, 1, 1], [], []>} : vector<4x32xbf16>, vector<32x32xbf16>, vector<4x32xf32> -> vector<4x32xf32>
    %76 = arith.truncf %74 : vector<4x32xf32> to vector<4x32xbf16>
    %cst_33 = arith.constant dense<0.000000e+00> : vector<4x32xf32>
    %77 = tpu.matmul %76, %4, %cst_33 {dimension_numbers = #tpu.dot_dimension_numbers<[1], [0], [0], [1], [0, 0, 1, 1], [], []>} : vector<4x32xbf16>, vector<32x32xbf16>, vector<4x32xf32> -> vector<4x32xf32>
    %78 = arith.addf %75, %77 : vector<4x32xf32>
    %cst_34 = arith.constant 0.000000e+00 : f32
    %79 = vector.broadcast %cst_34 : f32 to vector<4x32xf32>
    %80 = arith.maximumf %78, %79 : vector<4x32xf32>
    %81 = arith.truncf %80 : vector<4x32xf32> to vector<4x32xbf16>
    %cst_35 = arith.constant dense<0.000000e+00> : vector<4x128xf32>
    %82 = tpu.matmul %81, %5, %cst_35 {dimension_numbers = #tpu.dot_dimension_numbers<[1], [0], [0], [1], [0, 0, 1, 1], [], []>} : vector<4x32xbf16>, vector<32x128xbf16>, vector<4x128xf32> -> vector<4x128xf32>
    %cst_36 = arith.constant dense<0.000000e+00> : vector<4x128xf32>
    %83 = tpu.matmul %21, %6, %cst_36 {dimension_numbers = #tpu.dot_dimension_numbers<[1], [0], [0], [1], [0, 0, 1, 1], [], []>} : vector<4x32xbf16>, vector<32x128xbf16>, vector<4x128xf32> -> vector<4x128xf32>
    %84 = arith.addf %82, %83 : vector<4x128xf32>
    %85 = arith.addf %84, %11 : vector<4x128xf32>
    %86 = vector.extract_strided_slice %85 {offsets = [0, 0], sizes = [4, 32], strides = [1, 1]} : vector<4x128xf32> to vector<4x32xf32>
    %87 = arith.negf %86 : vector<4x32xf32>
    %88 = math.exp %87 : vector<4x32xf32>
    %cst_37 = arith.constant 1.000000e+00 : f32
    %89 = vector.broadcast %cst_37 : f32 to vector<4x32xf32>
    %90 = arith.addf %89, %88 : vector<4x32xf32>
    %91 = arith.divf %89, %90 : vector<4x32xf32>
    %92 = vector.extract_strided_slice %85 {offsets = [0, 32], sizes = [4, 32], strides = [1, 1]} : vector<4x128xf32> to vector<4x32xf32>
    %93 = arith.negf %92 : vector<4x32xf32>
    %94 = math.exp %93 : vector<4x32xf32>
    %cst_38 = arith.constant 1.000000e+00 : f32
    %95 = vector.broadcast %cst_38 : f32 to vector<4x32xf32>
    %96 = arith.addf %95, %94 : vector<4x32xf32>
    %97 = arith.divf %95, %96 : vector<4x32xf32>
    %98 = vector.extract_strided_slice %85 {offsets = [0, 64], sizes = [4, 32], strides = [1, 1]} : vector<4x128xf32> to vector<4x32xf32>
    %99 = math.tanh %98 : vector<4x32xf32>
    %100 = vector.extract_strided_slice %85 {offsets = [0, 96], sizes = [4, 32], strides = [1, 1]} : vector<4x128xf32> to vector<4x32xf32>
    %101 = arith.negf %100 : vector<4x32xf32>
    %102 = math.exp %101 : vector<4x32xf32>
    %cst_39 = arith.constant 1.000000e+00 : f32
    %103 = vector.broadcast %cst_39 : f32 to vector<4x32xf32>
    %104 = arith.addf %103, %102 : vector<4x32xf32>
    %105 = arith.divf %103, %104 : vector<4x32xf32>
    %106 = arith.mulf %97, %19 : vector<4x32xf32>
    %107 = arith.mulf %91, %99 : vector<4x32xf32>
    %108 = arith.addf %106, %107 : vector<4x32xf32>
    %109 = math.tanh %108 : vector<4x32xf32>
    %110 = arith.mulf %105, %109 : vector<4x32xf32>
    %111 = arith.truncf %110 : vector<4x32xf32> to vector<4x32xbf16>
    %cst_40 = arith.constant dense<0.000000e+00> : vector<4x128xf32>
    %112 = tpu.matmul %111, %7, %cst_40 {dimension_numbers = #tpu.dot_dimension_numbers<[1], [0], [0], [1], [0, 0, 1, 1], [], []>} : vector<4x32xbf16>, vector<32x128xbf16>, vector<4x128xf32> -> vector<4x128xf32>
    %113 = arith.addf %112, %14 : vector<4x128xf32>
    %114 = arith.index_cast %c0_i32 : i32 to index
    %c0_41 = arith.constant 0 : index
    %c0_42 = arith.constant 0 : index
    %115 = vector.load %arg14[%114, %c0_41, %c0_42] : memref<5x4x128xf32, #tpu.memory_space<vmem>>, vector<1x4x128xf32>
    %116 = vector.shape_cast %115 : vector<1x4x128xf32> to vector<4x128xf32>
    %117 = vector.shape_cast %113 : vector<4x128xf32> to vector<1x4x128xf32>
    tpu.vector_store %arg14[%114, %c0_41, %c0_42], %117 {strides = array<i32>} : memref<5x4x128xf32, #tpu.memory_space<vmem>>, vector<1x4x128xf32>,
    %cst_43 = arith.constant dense<0xFF800000> : vector<4xf32>
    %118 = vector.multi_reduction <maximumf>, %113, %cst_43 [1] : vector<4x128xf32> to vector<4xf32>
    %119 = vector.shape_cast %118 : vector<4xf32> to vector<4x1xf32>
    %120 = vector.broadcast %119 : vector<4x1xf32> to vector<4x128xf32>
    %121 = arith.cmpf oeq, %113, %120 : vector<4x128xf32>
    %c128_i32 = arith.constant 128 : i32
    %122 = vector.broadcast %c128_i32 : i32 to vector<4x128xi32>
    %123 = arith.select %121, %15, %122 : vector<4x128xi1>, vector<4x128xi32>
    %cst_44 = arith.constant dense<2147483647> : vector<4xi32>
    %124 = vector.multi_reduction <minsi>, %123, %cst_44 [1] : vector<4x128xi32> to vector<4xi32>
    %125 = vector.shape_cast %124 : vector<4xi32> to vector<4x1xi32>
    %126 = vector.broadcast %125 : vector<4x1xi32> to vector<4x128xi32>
    %127 = arith.cmpi eq, %15, %126 : vector<4x128xi32>
    %128 = arith.extui %127 : vector<4x128xi1> to vector<4x128xi32>
    %129 = arith.sitofp %128 : vector<4x128xi32> to vector<4x128xf32>
    %130 = arith.truncf %129 : vector<4x128xf32> to vector<4x128xbf16>
    %cst_45 = arith.constant dense<0.000000e+00> : vector<4x32xf32>
    %131 = tpu.matmul %130, %0, %cst_45 {dimension_numbers = #tpu.dot_dimension_numbers<[1], [0], [0], [1], [0, 0, 1, 1], [], []>} : vector<4x128xbf16>, vector<128x32xbf16>, vector<4x32xf32> -> vector<4x32xf32>
    %c1_i32 = arith.constant 1 : i32
    %132 = arith.truncf %131 : vector<4x32xf32> to vector<4x32xbf16>
    %133 = arith.truncf %110 : vector<4x32xf32> to vector<4x32xbf16>
    %cst_46 = arith.constant dense<0.000000e+00> : vector<4x10xf32>
    %134 = tpu.matmul %132, %1, %cst_46 {dimension_numbers = #tpu.dot_dimension_numbers<[1], [0], [0], [1], [0, 0, 1, 1], [], []>} : vector<4x32xbf16>, vector<32x10xbf16>, vector<4x10xf32> -> vector<4x10xf32>
    %cst_47 = arith.constant dense<0.000000e+00> : vector<4x10xf32>
    %135 = tpu.matmul %133, %2, %cst_47 {dimension_numbers = #tpu.dot_dimension_numbers<[1], [0], [0], [1], [0, 0, 1, 1], [], []>} : vector<4x32xbf16>, vector<32x10xbf16>, vector<4x10xf32> -> vector<4x10xf32>
    %136 = arith.addf %134, %135 : vector<4x10xf32>
    %cst_48 = arith.constant dense<0xFF800000> : vector<4xf32>
    %137 = vector.multi_reduction <maximumf>, %136, %cst_48 [1] : vector<4x10xf32> to vector<4xf32>
    %138 = vector.shape_cast %137 : vector<4xf32> to vector<4x1xf32>
    %139 = vector.broadcast %138 : vector<4x1xf32> to vector<4x10xf32>
    %140 = arith.subf %136, %139 : vector<4x10xf32>
    %141 = math.exp %140 : vector<4x10xf32>
    %cst_49 = arith.constant dense<0.000000e+00> : vector<4xf32>
    %142 = vector.multi_reduction <add>, %141, %cst_49 [1] : vector<4x10xf32> to vector<4xf32>
    %143 = vector.shape_cast %142 : vector<4xf32> to vector<4x1xf32>
    %144 = vector.broadcast %143 : vector<4x1xf32> to vector<4x10xf32>
    %145 = arith.divf %141, %144 : vector<4x10xf32>
    %146 = vector.extract_strided_slice %145 {offsets = [0, 0], sizes = [4, 1], strides = [1, 1]} : vector<4x10xf32> to vector<4x1xf32>
    %147 = vector.extract_strided_slice %8 {offsets = [0, 0, 0], sizes = [1, 4, 32], strides = [1, 1, 1]} : vector<7x4x32xf32> to vector<1x4x32xf32>
    %148 = vector.shape_cast %147 : vector<1x4x32xf32> to vector<4x32xf32>
    %149 = vector.broadcast %146 : vector<4x1xf32> to vector<4x32xf32>
    %150 = arith.mulf %149, %148 : vector<4x32xf32>
    %151 = vector.extract_strided_slice %145 {offsets = [0, 1], sizes = [4, 1], strides = [1, 1]} : vector<4x10xf32> to vector<4x1xf32>
    %152 = vector.extract_strided_slice %8 {offsets = [1, 0, 0], sizes = [1, 4, 32], strides = [1, 1, 1]} : vector<7x4x32xf32> to vector<1x4x32xf32>
    %153 = vector.shape_cast %152 : vector<1x4x32xf32> to vector<4x32xf32>
    %154 = vector.broadcast %151 : vector<4x1xf32> to vector<4x32xf32>
    %155 = arith.mulf %154, %153 : vector<4x32xf32>
    %156 = arith.addf %150, %155 : vector<4x32xf32>
    %157 = vector.extract_strided_slice %145 {offsets = [0, 2], sizes = [4, 1], strides = [1, 1]} : vector<4x10xf32> to vector<4x1xf32>
    %158 = vector.extract_strided_slice %8 {offsets = [2, 0, 0], sizes = [1, 4, 32], strides = [1, 1, 1]} : vector<7x4x32xf32> to vector<1x4x32xf32>
    %159 = vector.shape_cast %158 : vector<1x4x32xf32> to vector<4x32xf32>
    %160 = vector.broadcast %157 : vector<4x1xf32> to vector<4x32xf32>
    %161 = arith.mulf %160, %159 : vector<4x32xf32>
    %162 = arith.addf %156, %161 : vector<4x32xf32>
    %163 = vector.extract_strided_slice %145 {offsets = [0, 3], sizes = [4, 1], strides = [1, 1]} : vector<4x10xf32> to vector<4x1xf32>
    %164 = vector.extract_strided_slice %8 {offsets = [3, 0, 0], sizes = [1, 4, 32], strides = [1, 1, 1]} : vector<7x4x32xf32> to vector<1x4x32xf32>
    %165 = vector.shape_cast %164 : vector<1x4x32xf32> to vector<4x32xf32>
    %166 = vector.broadcast %163 : vector<4x1xf32> to vector<4x32xf32>
    %167 = arith.mulf %166, %165 : vector<4x32xf32>
    %168 = arith.addf %162, %167 : vector<4x32xf32>
    %169 = vector.extract_strided_slice %145 {offsets = [0, 4], sizes = [4, 1], strides = [1, 1]} : vector<4x10xf32> to vector<4x1xf32>
    %170 = vector.extract_strided_slice %8 {offsets = [4, 0, 0], sizes = [1, 4, 32], strides = [1, 1, 1]} : vector<7x4x32xf32> to vector<1x4x32xf32>
    %171 = vector.shape_cast %170 : vector<1x4x32xf32> to vector<4x32xf32>
    %172 = vector.broadcast %169 : vector<4x1xf32> to vector<4x32xf32>
    %173 = arith.mulf %172, %171 : vector<4x32xf32>
    %174 = arith.addf %168, %173 : vector<4x32xf32>
    %175 = vector.extract_strided_slice %145 {offsets = [0, 5], sizes = [4, 1], strides = [1, 1]} : vector<4x10xf32> to vector<4x1xf32>
    %176 = vector.extract_strided_slice %8 {offsets = [5, 0, 0], sizes = [1, 4, 32], strides = [1, 1, 1]} : vector<7x4x32xf32> to vector<1x4x32xf32>
    %177 = vector.shape_cast %176 : vector<1x4x32xf32> to vector<4x32xf32>
    %178 = vector.broadcast %175 : vector<4x1xf32> to vector<4x32xf32>
    %179 = arith.mulf %178, %177 : vector<4x32xf32>
    %180 = arith.addf %174, %179 : vector<4x32xf32>
    %181 = vector.extract_strided_slice %145 {offsets = [0, 6], sizes = [4, 1], strides = [1, 1]} : vector<4x10xf32> to vector<4x1xf32>
    %182 = vector.extract_strided_slice %8 {offsets = [6, 0, 0], sizes = [1, 4, 32], strides = [1, 1, 1]} : vector<7x4x32xf32> to vector<1x4x32xf32>
    %183 = vector.shape_cast %182 : vector<1x4x32xf32> to vector<4x32xf32>
    %184 = vector.broadcast %181 : vector<4x1xf32> to vector<4x32xf32>
    %185 = arith.mulf %184, %183 : vector<4x32xf32>
    %186 = arith.addf %180, %185 : vector<4x32xf32>
    %cst_50 = arith.constant dense<0.000000e+00> : vector<4x32xf32>
    %187 = tpu.matmul %132, %3, %cst_50 {dimension_numbers = #tpu.dot_dimension_numbers<[1], [0], [0], [1], [0, 0, 1, 1], [], []>} : vector<4x32xbf16>, vector<32x32xbf16>, vector<4x32xf32> -> vector<4x32xf32>
    %188 = arith.truncf %186 : vector<4x32xf32> to vector<4x32xbf16>
    %cst_51 = arith.constant dense<0.000000e+00> : vector<4x32xf32>
    %189 = tpu.matmul %188, %4, %cst_51 {dimension_numbers = #tpu.dot_dimension_numbers<[1], [0], [0], [1], [0, 0, 1, 1], [], []>} : vector<4x32xbf16>, vector<32x32xbf16>, vector<4x32xf32> -> vector<4x32xf32>
    %190 = arith.addf %187, %189 : vector<4x32xf32>
    %cst_52 = arith.constant 0.000000e+00 : f32
    %191 = vector.broadcast %cst_52 : f32 to vector<4x32xf32>
    %192 = arith.maximumf %190, %191 : vector<4x32xf32>
    %193 = arith.truncf %192 : vector<4x32xf32> to vector<4x32xbf16>
    %cst_53 = arith.constant dense<0.000000e+00> : vector<4x128xf32>
    %194 = tpu.matmul %193, %5, %cst_53 {dimension_numbers = #tpu.dot_dimension_numbers<[1], [0], [0], [1], [0, 0, 1, 1], [], []>} : vector<4x32xbf16>, vector<32x128xbf16>, vector<4x128xf32> -> vector<4x128xf32>
    %cst_54 = arith.constant dense<0.000000e+00> : vector<4x128xf32>
    %195 = tpu.matmul %133, %6, %cst_54 {dimension_numbers = #tpu.dot_dimension_numbers<[1], [0], [0], [1], [0, 0, 1, 1], [], []>} : vector<4x32xbf16>, vector<32x128xbf16>, vector<4x128xf32> -> vector<4x128xf32>
    %196 = arith.addf %194, %195 : vector<4x128xf32>
    %197 = arith.addf %196, %11 : vector<4x128xf32>
    %198 = vector.extract_strided_slice %197 {offsets = [0, 0], sizes = [4, 32], strides = [1, 1]} : vector<4x128xf32> to vector<4x32xf32>
    %199 = arith.negf %198 : vector<4x32xf32>
    %200 = math.exp %199 : vector<4x32xf32>
    %cst_55 = arith.constant 1.000000e+00 : f32
    %201 = vector.broadcast %cst_55 : f32 to vector<4x32xf32>
    %202 = arith.addf %201, %200 : vector<4x32xf32>
    %203 = arith.divf %201, %202 : vector<4x32xf32>
    %204 = vector.extract_strided_slice %197 {offsets = [0, 32], sizes = [4, 32], strides = [1, 1]} : vector<4x128xf32> to vector<4x32xf32>
    %205 = arith.negf %204 : vector<4x32xf32>
    %206 = math.exp %205 : vector<4x32xf32>
    %cst_56 = arith.constant 1.000000e+00 : f32
    %207 = vector.broadcast %cst_56 : f32 to vector<4x32xf32>
    %208 = arith.addf %207, %206 : vector<4x32xf32>
    %209 = arith.divf %207, %208 : vector<4x32xf32>
    %210 = vector.extract_strided_slice %197 {offsets = [0, 64], sizes = [4, 32], strides = [1, 1]} : vector<4x128xf32> to vector<4x32xf32>
    %211 = math.tanh %210 : vector<4x32xf32>
    %212 = vector.extract_strided_slice %197 {offsets = [0, 96], sizes = [4, 32], strides = [1, 1]} : vector<4x128xf32> to vector<4x32xf32>
    %213 = arith.negf %212 : vector<4x32xf32>
    %214 = math.exp %213 : vector<4x32xf32>
    %cst_57 = arith.constant 1.000000e+00 : f32
    %215 = vector.broadcast %cst_57 : f32 to vector<4x32xf32>
    %216 = arith.addf %215, %214 : vector<4x32xf32>
    %217 = arith.divf %215, %216 : vector<4x32xf32>
    %218 = arith.mulf %209, %108 : vector<4x32xf32>
    %219 = arith.mulf %203, %211 : vector<4x32xf32>
    %220 = arith.addf %218, %219 : vector<4x32xf32>
    %221 = math.tanh %220 : vector<4x32xf32>
    %222 = arith.mulf %217, %221 : vector<4x32xf32>
    %223 = arith.truncf %222 : vector<4x32xf32> to vector<4x32xbf16>
    %cst_58 = arith.constant dense<0.000000e+00> : vector<4x128xf32>
    %224 = tpu.matmul %223, %7, %cst_58 {dimension_numbers = #tpu.dot_dimension_numbers<[1], [0], [0], [1], [0, 0, 1, 1], [], []>} : vector<4x32xbf16>, vector<32x128xbf16>, vector<4x128xf32> -> vector<4x128xf32>
    %225 = arith.addf %224, %14 : vector<4x128xf32>
    %226 = arith.index_cast %c1_i32 : i32 to index
    %c0_59 = arith.constant 0 : index
    %c0_60 = arith.constant 0 : index
    %227 = vector.load %arg14[%226, %c0_59, %c0_60] : memref<5x4x128xf32, #tpu.memory_space<vmem>>, vector<1x4x128xf32>
    %228 = vector.shape_cast %227 : vector<1x4x128xf32> to vector<4x128xf32>
    %229 = vector.shape_cast %225 : vector<4x128xf32> to vector<1x4x128xf32>
    tpu.vector_store %arg14[%226, %c0_59, %c0_60], %229 {strides = array<i32>} : memref<5x4x128xf32, #tpu.memory_space<vmem>>, vector<1x4x128xf32>,
    %cst_61 = arith.constant dense<0xFF800000> : vector<4xf32>
    %230 = vector.multi_reduction <maximumf>, %225, %cst_61 [1] : vector<4x128xf32> to vector<4xf32>
    %231 = vector.shape_cast %230 : vector<4xf32> to vector<4x1xf32>
    %232 = vector.broadcast %231 : vector<4x1xf32> to vector<4x128xf32>
    %233 = arith.cmpf oeq, %225, %232 : vector<4x128xf32>
    %c128_i32_62 = arith.constant 128 : i32
    %234 = vector.broadcast %c128_i32_62 : i32 to vector<4x128xi32>
    %235 = arith.select %233, %15, %234 : vector<4x128xi1>, vector<4x128xi32>
    %cst_63 = arith.constant dense<2147483647> : vector<4xi32>
    %236 = vector.multi_reduction <minsi>, %235, %cst_63 [1] : vector<4x128xi32> to vector<4xi32>
    %237 = vector.shape_cast %236 : vector<4xi32> to vector<4x1xi32>
    %238 = vector.broadcast %237 : vector<4x1xi32> to vector<4x128xi32>
    %239 = arith.cmpi eq, %15, %238 : vector<4x128xi32>
    %240 = arith.extui %239 : vector<4x128xi1> to vector<4x128xi32>
    %241 = arith.sitofp %240 : vector<4x128xi32> to vector<4x128xf32>
    %242 = arith.truncf %241 : vector<4x128xf32> to vector<4x128xbf16>
    %cst_64 = arith.constant dense<0.000000e+00> : vector<4x32xf32>
    %243 = tpu.matmul %242, %0, %cst_64 {dimension_numbers = #tpu.dot_dimension_numbers<[1], [0], [0], [1], [0, 0, 1, 1], [], []>} : vector<4x128xbf16>, vector<128x32xbf16>, vector<4x32xf32> -> vector<4x32xf32>
    %c2_i32 = arith.constant 2 : i32
    %244 = arith.truncf %243 : vector<4x32xf32> to vector<4x32xbf16>
    %245 = arith.truncf %222 : vector<4x32xf32> to vector<4x32xbf16>
    %cst_65 = arith.constant dense<0.000000e+00> : vector<4x10xf32>
    %246 = tpu.matmul %244, %1, %cst_65 {dimension_numbers = #tpu.dot_dimension_numbers<[1], [0], [0], [1], [0, 0, 1, 1], [], []>} : vector<4x32xbf16>, vector<32x10xbf16>, vector<4x10xf32> -> vector<4x10xf32>
    %cst_66 = arith.constant dense<0.000000e+00> : vector<4x10xf32>
    %247 = tpu.matmul %245, %2, %cst_66 {dimension_numbers = #tpu.dot_dimension_numbers<[1], [0], [0], [1], [0, 0, 1, 1], [], []>} : vector<4x32xbf16>, vector<32x10xbf16>, vector<4x10xf32> -> vector<4x10xf32>
    %248 = arith.addf %246, %247 : vector<4x10xf32>
    %cst_67 = arith.constant dense<0xFF800000> : vector<4xf32>
    %249 = vector.multi_reduction <maximumf>, %248, %cst_67 [1] : vector<4x10xf32> to vector<4xf32>
    %250 = vector.shape_cast %249 : vector<4xf32> to vector<4x1xf32>
    %251 = vector.broadcast %250 : vector<4x1xf32> to vector<4x10xf32>
    %252 = arith.subf %248, %251 : vector<4x10xf32>
    %253 = math.exp %252 : vector<4x10xf32>
    %cst_68 = arith.constant dense<0.000000e+00> : vector<4xf32>
    %254 = vector.multi_reduction <add>, %253, %cst_68 [1] : vector<4x10xf32> to vector<4xf32>
    %255 = vector.shape_cast %254 : vector<4xf32> to vector<4x1xf32>
    %256 = vector.broadcast %255 : vector<4x1xf32> to vector<4x10xf32>
    %257 = arith.divf %253, %256 : vector<4x10xf32>
    %258 = vector.extract_strided_slice %257 {offsets = [0, 0], sizes = [4, 1], strides = [1, 1]} : vector<4x10xf32> to vector<4x1xf32>
    %259 = vector.extract_strided_slice %8 {offsets = [0, 0, 0], sizes = [1, 4, 32], strides = [1, 1, 1]} : vector<7x4x32xf32> to vector<1x4x32xf32>
    %260 = vector.shape_cast %259 : vector<1x4x32xf32> to vector<4x32xf32>
    %261 = vector.broadcast %258 : vector<4x1xf32> to vector<4x32xf32>
    %262 = arith.mulf %261, %260 : vector<4x32xf32>
    %263 = vector.extract_strided_slice %257 {offsets = [0, 1], sizes = [4, 1], strides = [1, 1]} : vector<4x10xf32> to vector<4x1xf32>
    %264 = vector.extract_strided_slice %8 {offsets = [1, 0, 0], sizes = [1, 4, 32], strides = [1, 1, 1]} : vector<7x4x32xf32> to vector<1x4x32xf32>
    %265 = vector.shape_cast %264 : vector<1x4x32xf32> to vector<4x32xf32>
    %266 = vector.broadcast %263 : vector<4x1xf32> to vector<4x32xf32>
    %267 = arith.mulf %266, %265 : vector<4x32xf32>
    %268 = arith.addf %262, %267 : vector<4x32xf32>
    %269 = vector.extract_strided_slice %257 {offsets = [0, 2], sizes = [4, 1], strides = [1, 1]} : vector<4x10xf32> to vector<4x1xf32>
    %270 = vector.extract_strided_slice %8 {offsets = [2, 0, 0], sizes = [1, 4, 32], strides = [1, 1, 1]} : vector<7x4x32xf32> to vector<1x4x32xf32>
    %271 = vector.shape_cast %270 : vector<1x4x32xf32> to vector<4x32xf32>
    %272 = vector.broadcast %269 : vector<4x1xf32> to vector<4x32xf32>
    %273 = arith.mulf %272, %271 : vector<4x32xf32>
    %274 = arith.addf %268, %273 : vector<4x32xf32>
    %275 = vector.extract_strided_slice %257 {offsets = [0, 3], sizes = [4, 1], strides = [1, 1]} : vector<4x10xf32> to vector<4x1xf32>
    %276 = vector.extract_strided_slice %8 {offsets = [3, 0, 0], sizes = [1, 4, 32], strides = [1, 1, 1]} : vector<7x4x32xf32> to vector<1x4x32xf32>
    %277 = vector.shape_cast %276 : vector<1x4x32xf32> to vector<4x32xf32>
    %278 = vector.broadcast %275 : vector<4x1xf32> to vector<4x32xf32>
    %279 = arith.mulf %278, %277 : vector<4x32xf32>
    %280 = arith.addf %274, %279 : vector<4x32xf32>
    %281 = vector.extract_strided_slice %257 {offsets = [0, 4], sizes = [4, 1], strides = [1, 1]} : vector<4x10xf32> to vector<4x1xf32>
    %282 = vector.extract_strided_slice %8 {offsets = [4, 0, 0], sizes = [1, 4, 32], strides = [1, 1, 1]} : vector<7x4x32xf32> to vector<1x4x32xf32>
    %283 = vector.shape_cast %282 : vector<1x4x32xf32> to vector<4x32xf32>
    %284 = vector.broadcast %281 : vector<4x1xf32> to vector<4x32xf32>
    %285 = arith.mulf %284, %283 : vector<4x32xf32>
    %286 = arith.addf %280, %285 : vector<4x32xf32>
    %287 = vector.extract_strided_slice %257 {offsets = [0, 5], sizes = [4, 1], strides = [1, 1]} : vector<4x10xf32> to vector<4x1xf32>
    %288 = vector.extract_strided_slice %8 {offsets = [5, 0, 0], sizes = [1, 4, 32], strides = [1, 1, 1]} : vector<7x4x32xf32> to vector<1x4x32xf32>
    %289 = vector.shape_cast %288 : vector<1x4x32xf32> to vector<4x32xf32>
    %290 = vector.broadcast %287 : vector<4x1xf32> to vector<4x32xf32>
    %291 = arith.mulf %290, %289 : vector<4x32xf32>
    %292 = arith.addf %286, %291 : vector<4x32xf32>
    %293 = vector.extract_strided_slice %257 {offsets = [0, 6], sizes = [4, 1], strides = [1, 1]} : vector<4x10xf32> to vector<4x1xf32>
    %294 = vector.extract_strided_slice %8 {offsets = [6, 0, 0], sizes = [1, 4, 32], strides = [1, 1, 1]} : vector<7x4x32xf32> to vector<1x4x32xf32>
    %295 = vector.shape_cast %294 : vector<1x4x32xf32> to vector<4x32xf32>
    %296 = vector.broadcast %293 : vector<4x1xf32> to vector<4x32xf32>
    %297 = arith.mulf %296, %295 : vector<4x32xf32>
    %298 = arith.addf %292, %297 : vector<4x32xf32>
    %cst_69 = arith.constant dense<0.000000e+00> : vector<4x32xf32>
    %299 = tpu.matmul %244, %3, %cst_69 {dimension_numbers = #tpu.dot_dimension_numbers<[1], [0], [0], [1], [0, 0, 1, 1], [], []>} : vector<4x32xbf16>, vector<32x32xbf16>, vector<4x32xf32> -> vector<4x32xf32>
    %300 = arith.truncf %298 : vector<4x32xf32> to vector<4x32xbf16>
    %cst_70 = arith.constant dense<0.000000e+00> : vector<4x32xf32>
    %301 = tpu.matmul %300, %4, %cst_70 {dimension_numbers = #tpu.dot_dimension_numbers<[1], [0], [0], [1], [0, 0, 1, 1], [], []>} : vector<4x32xbf16>, vector<32x32xbf16>, vector<4x32xf32> -> vector<4x32xf32>
    %302 = arith.addf %299, %301 : vector<4x32xf32>
    %cst_71 = arith.constant 0.000000e+00 : f32
    %303 = vector.broadcast %cst_71 : f32 to vector<4x32xf32>
    %304 = arith.maximumf %302, %303 : vector<4x32xf32>
    %305 = arith.truncf %304 : vector<4x32xf32> to vector<4x32xbf16>
    %cst_72 = arith.constant dense<0.000000e+00> : vector<4x128xf32>
    %306 = tpu.matmul %305, %5, %cst_72 {dimension_numbers = #tpu.dot_dimension_numbers<[1], [0], [0], [1], [0, 0, 1, 1], [], []>} : vector<4x32xbf16>, vector<32x128xbf16>, vector<4x128xf32> -> vector<4x128xf32>
    %cst_73 = arith.constant dense<0.000000e+00> : vector<4x128xf32>
    %307 = tpu.matmul %245, %6, %cst_73 {dimension_numbers = #tpu.dot_dimension_numbers<[1], [0], [0], [1], [0, 0, 1, 1], [], []>} : vector<4x32xbf16>, vector<32x128xbf16>, vector<4x128xf32> -> vector<4x128xf32>
    %308 = arith.addf %306, %307 : vector<4x128xf32>
    %309 = arith.addf %308, %11 : vector<4x128xf32>
    %310 = vector.extract_strided_slice %309 {offsets = [0, 0], sizes = [4, 32], strides = [1, 1]} : vector<4x128xf32> to vector<4x32xf32>
    %311 = arith.negf %310 : vector<4x32xf32>
    %312 = math.exp %311 : vector<4x32xf32>
    %cst_74 = arith.constant 1.000000e+00 : f32
    %313 = vector.broadcast %cst_74 : f32 to vector<4x32xf32>
    %314 = arith.addf %313, %312 : vector<4x32xf32>
    %315 = arith.divf %313, %314 : vector<4x32xf32>
    %316 = vector.extract_strided_slice %309 {offsets = [0, 32], sizes = [4, 32], strides = [1, 1]} : vector<4x128xf32> to vector<4x32xf32>
    %317 = arith.negf %316 : vector<4x32xf32>
    %318 = math.exp %317 : vector<4x32xf32>
    %cst_75 = arith.constant 1.000000e+00 : f32
    %319 = vector.broadcast %cst_75 : f32 to vector<4x32xf32>
    %320 = arith.addf %319, %318 : vector<4x32xf32>
    %321 = arith.divf %319, %320 : vector<4x32xf32>
    %322 = vector.extract_strided_slice %309 {offsets = [0, 64], sizes = [4, 32], strides = [1, 1]} : vector<4x128xf32> to vector<4x32xf32>
    %323 = math.tanh %322 : vector<4x32xf32>
    %324 = vector.extract_strided_slice %309 {offsets = [0, 96], sizes = [4, 32], strides = [1, 1]} : vector<4x128xf32> to vector<4x32xf32>
    %325 = arith.negf %324 : vector<4x32xf32>
    %326 = math.exp %325 : vector<4x32xf32>
    %cst_76 = arith.constant 1.000000e+00 : f32
    %327 = vector.broadcast %cst_76 : f32 to vector<4x32xf32>
    %328 = arith.addf %327, %326 : vector<4x32xf32>
    %329 = arith.divf %327, %328 : vector<4x32xf32>
    %330 = arith.mulf %321, %220 : vector<4x32xf32>
    %331 = arith.mulf %315, %323 : vector<4x32xf32>
    %332 = arith.addf %330, %331 : vector<4x32xf32>
    %333 = math.tanh %332 : vector<4x32xf32>
    %334 = arith.mulf %329, %333 : vector<4x32xf32>
    %335 = arith.truncf %334 : vector<4x32xf32> to vector<4x32xbf16>
    %cst_77 = arith.constant dense<0.000000e+00> : vector<4x128xf32>
    %336 = tpu.matmul %335, %7, %cst_77 {dimension_numbers = #tpu.dot_dimension_numbers<[1], [0], [0], [1], [0, 0, 1, 1], [], []>} : vector<4x32xbf16>, vector<32x128xbf16>, vector<4x128xf32> -> vector<4x128xf32>
    %337 = arith.addf %336, %14 : vector<4x128xf32>
    %338 = arith.index_cast %c2_i32 : i32 to index
    %c0_78 = arith.constant 0 : index
    %c0_79 = arith.constant 0 : index
    %339 = vector.load %arg14[%338, %c0_78, %c0_79] : memref<5x4x128xf32, #tpu.memory_space<vmem>>, vector<1x4x128xf32>
    %340 = vector.shape_cast %339 : vector<1x4x128xf32> to vector<4x128xf32>
    %341 = vector.shape_cast %337 : vector<4x128xf32> to vector<1x4x128xf32>
    tpu.vector_store %arg14[%338, %c0_78, %c0_79], %341 {strides = array<i32>} : memref<5x4x128xf32, #tpu.memory_space<vmem>>, vector<1x4x128xf32>,
    %cst_80 = arith.constant dense<0xFF800000> : vector<4xf32>
    %342 = vector.multi_reduction <maximumf>, %337, %cst_80 [1] : vector<4x128xf32> to vector<4xf32>
    %343 = vector.shape_cast %342 : vector<4xf32> to vector<4x1xf32>
    %344 = vector.broadcast %343 : vector<4x1xf32> to vector<4x128xf32>
    %345 = arith.cmpf oeq, %337, %344 : vector<4x128xf32>
    %c128_i32_81 = arith.constant 128 : i32
    %346 = vector.broadcast %c128_i32_81 : i32 to vector<4x128xi32>
    %347 = arith.select %345, %15, %346 : vector<4x128xi1>, vector<4x128xi32>
    %cst_82 = arith.constant dense<2147483647> : vector<4xi32>
    %348 = vector.multi_reduction <minsi>, %347, %cst_82 [1] : vector<4x128xi32> to vector<4xi32>
    %349 = vector.shape_cast %348 : vector<4xi32> to vector<4x1xi32>
    %350 = vector.broadcast %349 : vector<4x1xi32> to vector<4x128xi32>
    %351 = arith.cmpi eq, %15, %350 : vector<4x128xi32>
    %352 = arith.extui %351 : vector<4x128xi1> to vector<4x128xi32>
    %353 = arith.sitofp %352 : vector<4x128xi32> to vector<4x128xf32>
    %354 = arith.truncf %353 : vector<4x128xf32> to vector<4x128xbf16>
    %cst_83 = arith.constant dense<0.000000e+00> : vector<4x32xf32>
    %355 = tpu.matmul %354, %0, %cst_83 {dimension_numbers = #tpu.dot_dimension_numbers<[1], [0], [0], [1], [0, 0, 1, 1], [], []>} : vector<4x128xbf16>, vector<128x32xbf16>, vector<4x32xf32> -> vector<4x32xf32>
    %c3_i32 = arith.constant 3 : i32
    %356 = arith.truncf %355 : vector<4x32xf32> to vector<4x32xbf16>
    %357 = arith.truncf %334 : vector<4x32xf32> to vector<4x32xbf16>
    %cst_84 = arith.constant dense<0.000000e+00> : vector<4x10xf32>
    %358 = tpu.matmul %356, %1, %cst_84 {dimension_numbers = #tpu.dot_dimension_numbers<[1], [0], [0], [1], [0, 0, 1, 1], [], []>} : vector<4x32xbf16>, vector<32x10xbf16>, vector<4x10xf32> -> vector<4x10xf32>
    %cst_85 = arith.constant dense<0.000000e+00> : vector<4x10xf32>
    %359 = tpu.matmul %357, %2, %cst_85 {dimension_numbers = #tpu.dot_dimension_numbers<[1], [0], [0], [1], [0, 0, 1, 1], [], []>} : vector<4x32xbf16>, vector<32x10xbf16>, vector<4x10xf32> -> vector<4x10xf32>
    %360 = arith.addf %358, %359 : vector<4x10xf32>
    %cst_86 = arith.constant dense<0xFF800000> : vector<4xf32>
    %361 = vector.multi_reduction <maximumf>, %360, %cst_86 [1] : vector<4x10xf32> to vector<4xf32>
    %362 = vector.shape_cast %361 : vector<4xf32> to vector<4x1xf32>
    %363 = vector.broadcast %362 : vector<4x1xf32> to vector<4x10xf32>
    %364 = arith.subf %360, %363 : vector<4x10xf32>
    %365 = math.exp %364 : vector<4x10xf32>
    %cst_87 = arith.constant dense<0.000000e+00> : vector<4xf32>
    %366 = vector.multi_reduction <add>, %365, %cst_87 [1] : vector<4x10xf32> to vector<4xf32>
    %367 = vector.shape_cast %366 : vector<4xf32> to vector<4x1xf32>
    %368 = vector.broadcast %367 : vector<4x1xf32> to vector<4x10xf32>
    %369 = arith.divf %365, %368 : vector<4x10xf32>
    %370 = vector.extract_strided_slice %369 {offsets = [0, 0], sizes = [4, 1], strides = [1, 1]} : vector<4x10xf32> to vector<4x1xf32>
    %371 = vector.extract_strided_slice %8 {offsets = [0, 0, 0], sizes = [1, 4, 32], strides = [1, 1, 1]} : vector<7x4x32xf32> to vector<1x4x32xf32>
    %372 = vector.shape_cast %371 : vector<1x4x32xf32> to vector<4x32xf32>
    %373 = vector.broadcast %370 : vector<4x1xf32> to vector<4x32xf32>
    %374 = arith.mulf %373, %372 : vector<4x32xf32>
    %375 = vector.extract_strided_slice %369 {offsets = [0, 1], sizes = [4, 1], strides = [1, 1]} : vector<4x10xf32> to vector<4x1xf32>
    %376 = vector.extract_strided_slice %8 {offsets = [1, 0, 0], sizes = [1, 4, 32], strides = [1, 1, 1]} : vector<7x4x32xf32> to vector<1x4x32xf32>
    %377 = vector.shape_cast %376 : vector<1x4x32xf32> to vector<4x32xf32>
    %378 = vector.broadcast %375 : vector<4x1xf32> to vector<4x32xf32>
    %379 = arith.mulf %378, %377 : vector<4x32xf32>
    %380 = arith.addf %374, %379 : vector<4x32xf32>
    %381 = vector.extract_strided_slice %369 {offsets = [0, 2], sizes = [4, 1], strides = [1, 1]} : vector<4x10xf32> to vector<4x1xf32>
    %382 = vector.extract_strided_slice %8 {offsets = [2, 0, 0], sizes = [1, 4, 32], strides = [1, 1, 1]} : vector<7x4x32xf32> to vector<1x4x32xf32>
    %383 = vector.shape_cast %382 : vector<1x4x32xf32> to vector<4x32xf32>
    %384 = vector.broadcast %381 : vector<4x1xf32> to vector<4x32xf32>
    %385 = arith.mulf %384, %383 : vector<4x32xf32>
    %386 = arith.addf %380, %385 : vector<4x32xf32>
    %387 = vector.extract_strided_slice %369 {offsets = [0, 3], sizes = [4, 1], strides = [1, 1]} : vector<4x10xf32> to vector<4x1xf32>
    %388 = vector.extract_strided_slice %8 {offsets = [3, 0, 0], sizes = [1, 4, 32], strides = [1, 1, 1]} : vector<7x4x32xf32> to vector<1x4x32xf32>
    %389 = vector.shape_cast %388 : vector<1x4x32xf32> to vector<4x32xf32>
    %390 = vector.broadcast %387 : vector<4x1xf32> to vector<4x32xf32>
    %391 = arith.mulf %390, %389 : vector<4x32xf32>
    %392 = arith.addf %386, %391 : vector<4x32xf32>
    %393 = vector.extract_strided_slice %369 {offsets = [0, 4], sizes = [4, 1], strides = [1, 1]} : vector<4x10xf32> to vector<4x1xf32>
    %394 = vector.extract_strided_slice %8 {offsets = [4, 0, 0], sizes = [1, 4, 32], strides = [1, 1, 1]} : vector<7x4x32xf32> to vector<1x4x32xf32>
    %395 = vector.shape_cast %394 : vector<1x4x32xf32> to vector<4x32xf32>
    %396 = vector.broadcast %393 : vector<4x1xf32> to vector<4x32xf32>
    %397 = arith.mulf %396, %395 : vector<4x32xf32>
    %398 = arith.addf %392, %397 : vector<4x32xf32>
    %399 = vector.extract_strided_slice %369 {offsets = [0, 5], sizes = [4, 1], strides = [1, 1]} : vector<4x10xf32> to vector<4x1xf32>
    %400 = vector.extract_strided_slice %8 {offsets = [5, 0, 0], sizes = [1, 4, 32], strides = [1, 1, 1]} : vector<7x4x32xf32> to vector<1x4x32xf32>
    %401 = vector.shape_cast %400 : vector<1x4x32xf32> to vector<4x32xf32>
    %402 = vector.broadcast %399 : vector<4x1xf32> to vector<4x32xf32>
    %403 = arith.mulf %402, %401 : vector<4x32xf32>
    %404 = arith.addf %398, %403 : vector<4x32xf32>
    %405 = vector.extract_strided_slice %369 {offsets = [0, 6], sizes = [4, 1], strides = [1, 1]} : vector<4x10xf32> to vector<4x1xf32>
    %406 = vector.extract_strided_slice %8 {offsets = [6, 0, 0], sizes = [1, 4, 32], strides = [1, 1, 1]} : vector<7x4x32xf32> to vector<1x4x32xf32>
    %407 = vector.shape_cast %406 : vector<1x4x32xf32> to vector<4x32xf32>
    %408 = vector.broadcast %405 : vector<4x1xf32> to vector<4x32xf32>
    %409 = arith.mulf %408, %407 : vector<4x32xf32>
    %410 = arith.addf %404, %409 : vector<4x32xf32>
    %cst_88 = arith.constant dense<0.000000e+00> : vector<4x32xf32>
    %411 = tpu.matmul %356, %3, %cst_88 {dimension_numbers = #tpu.dot_dimension_numbers<[1], [0], [0], [1], [0, 0, 1, 1], [], []>} : vector<4x32xbf16>, vector<32x32xbf16>, vector<4x32xf32> -> vector<4x32xf32>
    %412 = arith.truncf %410 : vector<4x32xf32> to vector<4x32xbf16>
    %cst_89 = arith.constant dense<0.000000e+00> : vector<4x32xf32>
    %413 = tpu.matmul %412, %4, %cst_89 {dimension_numbers = #tpu.dot_dimension_numbers<[1], [0], [0], [1], [0, 0, 1, 1], [], []>} : vector<4x32xbf16>, vector<32x32xbf16>, vector<4x32xf32> -> vector<4x32xf32>
    %414 = arith.addf %411, %413 : vector<4x32xf32>
    %cst_90 = arith.constant 0.000000e+00 : f32
    %415 = vector.broadcast %cst_90 : f32 to vector<4x32xf32>
    %416 = arith.maximumf %414, %415 : vector<4x32xf32>
    %417 = arith.truncf %416 : vector<4x32xf32> to vector<4x32xbf16>
    %cst_91 = arith.constant dense<0.000000e+00> : vector<4x128xf32>
    %418 = tpu.matmul %417, %5, %cst_91 {dimension_numbers = #tpu.dot_dimension_numbers<[1], [0], [0], [1], [0, 0, 1, 1], [], []>} : vector<4x32xbf16>, vector<32x128xbf16>, vector<4x128xf32> -> vector<4x128xf32>
    %cst_92 = arith.constant dense<0.000000e+00> : vector<4x128xf32>
    %419 = tpu.matmul %357, %6, %cst_92 {dimension_numbers = #tpu.dot_dimension_numbers<[1], [0], [0], [1], [0, 0, 1, 1], [], []>} : vector<4x32xbf16>, vector<32x128xbf16>, vector<4x128xf32> -> vector<4x128xf32>
    %420 = arith.addf %418, %419 : vector<4x128xf32>
    %421 = arith.addf %420, %11 : vector<4x128xf32>
    %422 = vector.extract_strided_slice %421 {offsets = [0, 0], sizes = [4, 32], strides = [1, 1]} : vector<4x128xf32> to vector<4x32xf32>
    %423 = arith.negf %422 : vector<4x32xf32>
    %424 = math.exp %423 : vector<4x32xf32>
    %cst_93 = arith.constant 1.000000e+00 : f32
    %425 = vector.broadcast %cst_93 : f32 to vector<4x32xf32>
    %426 = arith.addf %425, %424 : vector<4x32xf32>
    %427 = arith.divf %425, %426 : vector<4x32xf32>
    %428 = vector.extract_strided_slice %421 {offsets = [0, 32], sizes = [4, 32], strides = [1, 1]} : vector<4x128xf32> to vector<4x32xf32>
    %429 = arith.negf %428 : vector<4x32xf32>
    %430 = math.exp %429 : vector<4x32xf32>
    %cst_94 = arith.constant 1.000000e+00 : f32
    %431 = vector.broadcast %cst_94 : f32 to vector<4x32xf32>
    %432 = arith.addf %431, %430 : vector<4x32xf32>
    %433 = arith.divf %431, %432 : vector<4x32xf32>
    %434 = vector.extract_strided_slice %421 {offsets = [0, 64], sizes = [4, 32], strides = [1, 1]} : vector<4x128xf32> to vector<4x32xf32>
    %435 = math.tanh %434 : vector<4x32xf32>
    %436 = vector.extract_strided_slice %421 {offsets = [0, 96], sizes = [4, 32], strides = [1, 1]} : vector<4x128xf32> to vector<4x32xf32>
    %437 = arith.negf %436 : vector<4x32xf32>
    %438 = math.exp %437 : vector<4x32xf32>
    %cst_95 = arith.constant 1.000000e+00 : f32
    %439 = vector.broadcast %cst_95 : f32 to vector<4x32xf32>
    %440 = arith.addf %439, %438 : vector<4x32xf32>
    %441 = arith.divf %439, %440 : vector<4x32xf32>
    %442 = arith.mulf %433, %332 : vector<4x32xf32>
    %443 = arith.mulf %427, %435 : vector<4x32xf32>
    %444 = arith.addf %442, %443 : vector<4x32xf32>
    %445 = math.tanh %444 : vector<4x32xf32>
    %446 = arith.mulf %441, %445 : vector<4x32xf32>
    %447 = arith.truncf %446 : vector<4x32xf32> to vector<4x32xbf16>
    %cst_96 = arith.constant dense<0.000000e+00> : vector<4x128xf32>
    %448 = tpu.matmul %447, %7, %cst_96 {dimension_numbers = #tpu.dot_dimension_numbers<[1], [0], [0], [1], [0, 0, 1, 1], [], []>} : vector<4x32xbf16>, vector<32x128xbf16>, vector<4x128xf32> -> vector<4x128xf32>
    %449 = arith.addf %448, %14 : vector<4x128xf32>
    %450 = arith.index_cast %c3_i32 : i32 to index
    %c0_97 = arith.constant 0 : index
    %c0_98 = arith.constant 0 : index
    %451 = vector.load %arg14[%450, %c0_97, %c0_98] : memref<5x4x128xf32, #tpu.memory_space<vmem>>, vector<1x4x128xf32>
    %452 = vector.shape_cast %451 : vector<1x4x128xf32> to vector<4x128xf32>
    %453 = vector.shape_cast %449 : vector<4x128xf32> to vector<1x4x128xf32>
    tpu.vector_store %arg14[%450, %c0_97, %c0_98], %453 {strides = array<i32>} : memref<5x4x128xf32, #tpu.memory_space<vmem>>, vector<1x4x128xf32>,
    %cst_99 = arith.constant dense<0xFF800000> : vector<4xf32>
    %454 = vector.multi_reduction <maximumf>, %449, %cst_99 [1] : vector<4x128xf32> to vector<4xf32>
    %455 = vector.shape_cast %454 : vector<4xf32> to vector<4x1xf32>
    %456 = vector.broadcast %455 : vector<4x1xf32> to vector<4x128xf32>
    %457 = arith.cmpf oeq, %449, %456 : vector<4x128xf32>
    %c128_i32_100 = arith.constant 128 : i32
    %458 = vector.broadcast %c128_i32_100 : i32 to vector<4x128xi32>
    %459 = arith.select %457, %15, %458 : vector<4x128xi1>, vector<4x128xi32>
    %cst_101 = arith.constant dense<2147483647> : vector<4xi32>
    %460 = vector.multi_reduction <minsi>, %459, %cst_101 [1] : vector<4x128xi32> to vector<4xi32>
    %461 = vector.shape_cast %460 : vector<4xi32> to vector<4x1xi32>
    %462 = vector.broadcast %461 : vector<4x1xi32> to vector<4x128xi32>
    %463 = arith.cmpi eq, %15, %462 : vector<4x128xi32>
    %464 = arith.extui %463 : vector<4x128xi1> to vector<4x128xi32>
    %465 = arith.sitofp %464 : vector<4x128xi32> to vector<4x128xf32>
    %466 = arith.truncf %465 : vector<4x128xf32> to vector<4x128xbf16>
    %cst_102 = arith.constant dense<0.000000e+00> : vector<4x32xf32>
    %467 = tpu.matmul %466, %0, %cst_102 {dimension_numbers = #tpu.dot_dimension_numbers<[1], [0], [0], [1], [0, 0, 1, 1], [], []>} : vector<4x128xbf16>, vector<128x32xbf16>, vector<4x32xf32> -> vector<4x32xf32>
    %c4_i32 = arith.constant 4 : i32
    %468 = arith.truncf %467 : vector<4x32xf32> to vector<4x32xbf16>
    %469 = arith.truncf %446 : vector<4x32xf32> to vector<4x32xbf16>
    %cst_103 = arith.constant dense<0.000000e+00> : vector<4x10xf32>
    %470 = tpu.matmul %468, %1, %cst_103 {dimension_numbers = #tpu.dot_dimension_numbers<[1], [0], [0], [1], [0, 0, 1, 1], [], []>} : vector<4x32xbf16>, vector<32x10xbf16>, vector<4x10xf32> -> vector<4x10xf32>
    %cst_104 = arith.constant dense<0.000000e+00> : vector<4x10xf32>
    %471 = tpu.matmul %469, %2, %cst_104 {dimension_numbers = #tpu.dot_dimension_numbers<[1], [0], [0], [1], [0, 0, 1, 1], [], []>} : vector<4x32xbf16>, vector<32x10xbf16>, vector<4x10xf32> -> vector<4x10xf32>
    %472 = arith.addf %470, %471 : vector<4x10xf32>
    %cst_105 = arith.constant dense<0xFF800000> : vector<4xf32>
    %473 = vector.multi_reduction <maximumf>, %472, %cst_105 [1] : vector<4x10xf32> to vector<4xf32>
    %474 = vector.shape_cast %473 : vector<4xf32> to vector<4x1xf32>
    %475 = vector.broadcast %474 : vector<4x1xf32> to vector<4x10xf32>
    %476 = arith.subf %472, %475 : vector<4x10xf32>
    %477 = math.exp %476 : vector<4x10xf32>
    %cst_106 = arith.constant dense<0.000000e+00> : vector<4xf32>
    %478 = vector.multi_reduction <add>, %477, %cst_106 [1] : vector<4x10xf32> to vector<4xf32>
    %479 = vector.shape_cast %478 : vector<4xf32> to vector<4x1xf32>
    %480 = vector.broadcast %479 : vector<4x1xf32> to vector<4x10xf32>
    %481 = arith.divf %477, %480 : vector<4x10xf32>
    %482 = vector.extract_strided_slice %481 {offsets = [0, 0], sizes = [4, 1], strides = [1, 1]} : vector<4x10xf32> to vector<4x1xf32>
    %483 = vector.extract_strided_slice %8 {offsets = [0, 0, 0], sizes = [1, 4, 32], strides = [1, 1, 1]} : vector<7x4x32xf32> to vector<1x4x32xf32>
    %484 = vector.shape_cast %483 : vector<1x4x32xf32> to vector<4x32xf32>
    %485 = vector.broadcast %482 : vector<4x1xf32> to vector<4x32xf32>
    %486 = arith.mulf %485, %484 : vector<4x32xf32>
    %487 = vector.extract_strided_slice %481 {offsets = [0, 1], sizes = [4, 1], strides = [1, 1]} : vector<4x10xf32> to vector<4x1xf32>
    %488 = vector.extract_strided_slice %8 {offsets = [1, 0, 0], sizes = [1, 4, 32], strides = [1, 1, 1]} : vector<7x4x32xf32> to vector<1x4x32xf32>
    %489 = vector.shape_cast %488 : vector<1x4x32xf32> to vector<4x32xf32>
    %490 = vector.broadcast %487 : vector<4x1xf32> to vector<4x32xf32>
    %491 = arith.mulf %490, %489 : vector<4x32xf32>
    %492 = arith.addf %486, %491 : vector<4x32xf32>
    %493 = vector.extract_strided_slice %481 {offsets = [0, 2], sizes = [4, 1], strides = [1, 1]} : vector<4x10xf32> to vector<4x1xf32>
    %494 = vector.extract_strided_slice %8 {offsets = [2, 0, 0], sizes = [1, 4, 32], strides = [1, 1, 1]} : vector<7x4x32xf32> to vector<1x4x32xf32>
    %495 = vector.shape_cast %494 : vector<1x4x32xf32> to vector<4x32xf32>
    %496 = vector.broadcast %493 : vector<4x1xf32> to vector<4x32xf32>
    %497 = arith.mulf %496, %495 : vector<4x32xf32>
    %498 = arith.addf %492, %497 : vector<4x32xf32>
    %499 = vector.extract_strided_slice %481 {offsets = [0, 3], sizes = [4, 1], strides = [1, 1]} : vector<4x10xf32> to vector<4x1xf32>
    %500 = vector.extract_strided_slice %8 {offsets = [3, 0, 0], sizes = [1, 4, 32], strides = [1, 1, 1]} : vector<7x4x32xf32> to vector<1x4x32xf32>
    %501 = vector.shape_cast %500 : vector<1x4x32xf32> to vector<4x32xf32>
    %502 = vector.broadcast %499 : vector<4x1xf32> to vector<4x32xf32>
    %503 = arith.mulf %502, %501 : vector<4x32xf32>
    %504 = arith.addf %498, %503 : vector<4x32xf32>
    %505 = vector.extract_strided_slice %481 {offsets = [0, 4], sizes = [4, 1], strides = [1, 1]} : vector<4x10xf32> to vector<4x1xf32>
    %506 = vector.extract_strided_slice %8 {offsets = [4, 0, 0], sizes = [1, 4, 32], strides = [1, 1, 1]} : vector<7x4x32xf32> to vector<1x4x32xf32>
    %507 = vector.shape_cast %506 : vector<1x4x32xf32> to vector<4x32xf32>
    %508 = vector.broadcast %505 : vector<4x1xf32> to vector<4x32xf32>
    %509 = arith.mulf %508, %507 : vector<4x32xf32>
    %510 = arith.addf %504, %509 : vector<4x32xf32>
    %511 = vector.extract_strided_slice %481 {offsets = [0, 5], sizes = [4, 1], strides = [1, 1]} : vector<4x10xf32> to vector<4x1xf32>
    %512 = vector.extract_strided_slice %8 {offsets = [5, 0, 0], sizes = [1, 4, 32], strides = [1, 1, 1]} : vector<7x4x32xf32> to vector<1x4x32xf32>
    %513 = vector.shape_cast %512 : vector<1x4x32xf32> to vector<4x32xf32>
    %514 = vector.broadcast %511 : vector<4x1xf32> to vector<4x32xf32>
    %515 = arith.mulf %514, %513 : vector<4x32xf32>
    %516 = arith.addf %510, %515 : vector<4x32xf32>
    %517 = vector.extract_strided_slice %481 {offsets = [0, 6], sizes = [4, 1], strides = [1, 1]} : vector<4x10xf32> to vector<4x1xf32>
    %518 = vector.extract_strided_slice %8 {offsets = [6, 0, 0], sizes = [1, 4, 32], strides = [1, 1, 1]} : vector<7x4x32xf32> to vector<1x4x32xf32>
    %519 = vector.shape_cast %518 : vector<1x4x32xf32> to vector<4x32xf32>
    %520 = vector.broadcast %517 : vector<4x1xf32> to vector<4x32xf32>
    %521 = arith.mulf %520, %519 : vector<4x32xf32>
    %522 = arith.addf %516, %521 : vector<4x32xf32>
    %cst_107 = arith.constant dense<0.000000e+00> : vector<4x32xf32>
    %523 = tpu.matmul %468, %3, %cst_107 {dimension_numbers = #tpu.dot_dimension_numbers<[1], [0], [0], [1], [0, 0, 1, 1], [], []>} : vector<4x32xbf16>, vector<32x32xbf16>, vector<4x32xf32> -> vector<4x32xf32>
    %524 = arith.truncf %522 : vector<4x32xf32> to vector<4x32xbf16>
    %cst_108 = arith.constant dense<0.000000e+00> : vector<4x32xf32>
    %525 = tpu.matmul %524, %4, %cst_108 {dimension_numbers = #tpu.dot_dimension_numbers<[1], [0], [0], [1], [0, 0, 1, 1], [], []>} : vector<4x32xbf16>, vector<32x32xbf16>, vector<4x32xf32> -> vector<4x32xf32>
    %526 = arith.addf %523, %525 : vector<4x32xf32>
    %cst_109 = arith.constant 0.000000e+00 : f32
    %527 = vector.broadcast %cst_109 : f32 to vector<4x32xf32>
    %528 = arith.maximumf %526, %527 : vector<4x32xf32>
    %529 = arith.truncf %528 : vector<4x32xf32> to vector<4x32xbf16>
    %cst_110 = arith.constant dense<0.000000e+00> : vector<4x128xf32>
    %530 = tpu.matmul %529, %5, %cst_110 {dimension_numbers = #tpu.dot_dimension_numbers<[1], [0], [0], [1], [0, 0, 1, 1], [], []>} : vector<4x32xbf16>, vector<32x128xbf16>, vector<4x128xf32> -> vector<4x128xf32>
    %cst_111 = arith.constant dense<0.000000e+00> : vector<4x128xf32>
    %531 = tpu.matmul %469, %6, %cst_111 {dimension_numbers = #tpu.dot_dimension_numbers<[1], [0], [0], [1], [0, 0, 1, 1], [], []>} : vector<4x32xbf16>, vector<32x128xbf16>, vector<4x128xf32> -> vector<4x128xf32>
    %532 = arith.addf %530, %531 : vector<4x128xf32>
    %533 = arith.addf %532, %11 : vector<4x128xf32>
    %534 = vector.extract_strided_slice %533 {offsets = [0, 0], sizes = [4, 32], strides = [1, 1]} : vector<4x128xf32> to vector<4x32xf32>
    %535 = arith.negf %534 : vector<4x32xf32>
    %536 = math.exp %535 : vector<4x32xf32>
    %cst_112 = arith.constant 1.000000e+00 : f32
    %537 = vector.broadcast %cst_112 : f32 to vector<4x32xf32>
    %538 = arith.addf %537, %536 : vector<4x32xf32>
    %539 = arith.divf %537, %538 : vector<4x32xf32>
    %540 = vector.extract_strided_slice %533 {offsets = [0, 32], sizes = [4, 32], strides = [1, 1]} : vector<4x128xf32> to vector<4x32xf32>
    %541 = arith.negf %540 : vector<4x32xf32>
    %542 = math.exp %541 : vector<4x32xf32>
    %cst_113 = arith.constant 1.000000e+00 : f32
    %543 = vector.broadcast %cst_113 : f32 to vector<4x32xf32>
    %544 = arith.addf %543, %542 : vector<4x32xf32>
    %545 = arith.divf %543, %544 : vector<4x32xf32>
    %546 = vector.extract_strided_slice %533 {offsets = [0, 64], sizes = [4, 32], strides = [1, 1]} : vector<4x128xf32> to vector<4x32xf32>
    %547 = math.tanh %546 : vector<4x32xf32>
    %548 = vector.extract_strided_slice %533 {offsets = [0, 96], sizes = [4, 32], strides = [1, 1]} : vector<4x128xf32> to vector<4x32xf32>
    %549 = arith.negf %548 : vector<4x32xf32>
    %550 = math.exp %549 : vector<4x32xf32>
    %cst_114 = arith.constant 1.000000e+00 : f32
    %551 = vector.broadcast %cst_114 : f32 to vector<4x32xf32>
    %552 = arith.addf %551, %550 : vector<4x32xf32>
    %553 = arith.divf %551, %552 : vector<4x32xf32>
    %554 = arith.mulf %545, %444 : vector<4x32xf32>
    %555 = arith.mulf %539, %547 : vector<4x32xf32>
    %556 = arith.addf %554, %555 : vector<4x32xf32>
    %557 = math.tanh %556 : vector<4x32xf32>
    %558 = arith.mulf %553, %557 : vector<4x32xf32>
    %559 = arith.truncf %558 : vector<4x32xf32> to vector<4x32xbf16>
    %cst_115 = arith.constant dense<0.000000e+00> : vector<4x128xf32>
    %560 = tpu.matmul %559, %7, %cst_115 {dimension_numbers = #tpu.dot_dimension_numbers<[1], [0], [0], [1], [0, 0, 1, 1], [], []>} : vector<4x32xbf16>, vector<32x128xbf16>, vector<4x128xf32> -> vector<4x128xf32>
    %561 = arith.addf %560, %14 : vector<4x128xf32>
    %562 = arith.index_cast %c4_i32 : i32 to index
    %c0_116 = arith.constant 0 : index
    %c0_117 = arith.constant 0 : index
    %563 = vector.load %arg14[%562, %c0_116, %c0_117] : memref<5x4x128xf32, #tpu.memory_space<vmem>>, vector<1x4x128xf32>
    %564 = vector.shape_cast %563 : vector<1x4x128xf32> to vector<4x128xf32>
    %565 = vector.shape_cast %561 : vector<4x128xf32> to vector<1x4x128xf32>
    tpu.vector_store %arg14[%562, %c0_116, %c0_117], %565 {strides = array<i32>} : memref<5x4x128xf32, #tpu.memory_space<vmem>>, vector<1x4x128xf32>,
    %cst_118 = arith.constant dense<0xFF800000> : vector<4xf32>
    %566 = vector.multi_reduction <maximumf>, %561, %cst_118 [1] : vector<4x128xf32> to vector<4xf32>
    %567 = vector.shape_cast %566 : vector<4xf32> to vector<4x1xf32>
    %568 = vector.broadcast %567 : vector<4x1xf32> to vector<4x128xf32>
    %569 = arith.cmpf oeq, %561, %568 : vector<4x128xf32>
    %c128_i32_119 = arith.constant 128 : i32
    %570 = vector.broadcast %c128_i32_119 : i32 to vector<4x128xi32>
    %571 = arith.select %569, %15, %570 : vector<4x128xi1>, vector<4x128xi32>
    %cst_120 = arith.constant dense<2147483647> : vector<4xi32>
    %572 = vector.multi_reduction <minsi>, %571, %cst_120 [1] : vector<4x128xi32> to vector<4xi32>
    %573 = vector.shape_cast %572 : vector<4xi32> to vector<4x1xi32>
    %574 = vector.broadcast %573 : vector<4x1xi32> to vector<4x128xi32>
    %575 = arith.cmpi eq, %15, %574 : vector<4x128xi32>
    %576 = arith.extui %575 : vector<4x128xi1> to vector<4x128xi32>
    %577 = arith.sitofp %576 : vector<4x128xi32> to vector<4x128xf32>
    %578 = arith.truncf %577 : vector<4x128xf32> to vector<4x128xbf16>
    %cst_121 = arith.constant dense<0.000000e+00> : vector<4x32xf32>
    %579 = tpu.matmul %578, %0, %cst_121 {dimension_numbers = #tpu.dot_dimension_numbers<[1], [0], [0], [1], [0, 0, 1, 1], [], []>} : vector<4x128xbf16>, vector<128x32xbf16>, vector<4x32xf32> -> vector<4x32xf32>
    %c5_i32 = arith.constant 5 : i32
    %c0_122 = arith.constant 0 : index
    %c0_123 = arith.constant 0 : index
    %580 = vector.load %arg15[%c0_122, %c0_123] : memref<4x32xf32, #tpu.memory_space<vmem>>, vector<4x32xf32>
    tpu.vector_store %arg15[%c0_122, %c0_123], %558 {strides = array<i32>} : memref<4x32xf32, #tpu.memory_space<vmem>>, vector<4x32xf32>,
    %c0_124 = arith.constant 0 : index
    %c0_125 = arith.constant 0 : index
    %581 = vector.load %arg16[%c0_124, %c0_125] : memref<4x32xf32, #tpu.memory_space<vmem>>, vector<4x32xf32>
    tpu.vector_store %arg16[%c0_124, %c0_125], %556 {strides = array<i32>} : memref<4x32xf32, #tpu.memory_space<vmem>>, vector<4x32xf32>,
    return
  }
}

</mosaic_0001>

<bundles_post_ra>
// kernel: tpu_custom_call.1
= control target key start
LH: loop header
LB: loop body
LE: loop exit
PB: predicated region body
PF: predicated region fallthrough
CT: control target
= control target key end

     0   :  { %s4371_s0 = inlined_call_operand.hbm [shape: bf16[4,128], index: 0, kind: input, shape index: {}]   ;;  %s4372_s1 = inlined_call_operand.vmem [shape: f32[4,32], index: 1, kind: input, shape index: {}]   ;;  %s4373_s2 = inlined_call_operand.hbm [shape: f32[4,32], index: 2, kind: input, shape index: {}]   ;;  %s4374_s3 = inlined_call_operand.vmem [shape: f32[7,4,32], index: 3, kind: input, shape index: {}]   ;;  %s4375_s4 = inlined_call_operand.vmem [shape: bf16[128,32], index: 4, kind: input, shape index: {}]   ;;  %s4376_s5 = inlined_call_operand.vmem [shape: bf16[32,10], index: 5, kind: input, shape index: {}]   ;;  %s4377_s6 = inlined_call_operand.vmem [shape: bf16[32,10], index: 6, kind: input, shape index: {}]   ;;  %s4378_s7 = inlined_call_operand.vmem [shape: bf16[32,32], index: 7, kind: input, shape index: {}]   ;;  %s4379_s8 = inlined_call_operand.vmem [shape: bf16[32,32], index: 8, kind: input, shape index: {}]   ;;  %s4380_s9 = inlined_call_operand.vmem [shape: bf16[32,128], index: 9, kind: input, shape index: {}]   ;;  %s4381_s10 = inlined_call_operand.vmem [shape: bf16[32,128], index: 10, kind: input, shape index: {}]   ;;  %s4382_s11 = inlined_call_operand.vmem [shape: f32[1,128], index: 11, kind: input, shape index: {}]   ;;  %s4383_s12 = inlined_call_operand.vmem [shape: bf16[32,128], index: 12, kind: input, shape index: {}]   ;;  %s4384_s13 = inlined_call_operand.vmem [shape: f32[1,128], index: 13, kind: input, shape index: {}]   ;;  %s4385_s14 = inlined_call_operand.hbm [shape: f32[5,4,128], index: 14, kind: output, shape index: {0}]   ;;  %s4386_s15 = inlined_call_operand.hbm [shape: f32[4,32], index: 15, kind: output, shape index: {1}]   ;;  %s4387_s16 = inlined_call_operand.hbm [shape: f32[4,32], index: 16, kind: output, shape index: {2}]  }
   0x1   :  { %4388 = sst [smem:[#allocation15_spill]] %s4371_s0 }
   0x2   :  { %22 = vsyncpa [#allocation3], 0 }
   0x3   :  { %23 = vsyncpa [#allocation6], 0 }
   0x4   :  { %24 = vsyncpa [#allocation4], 0 }
   0x5   :  { %25 = vsyncpa [#allocation9], 0  ;;  %s3422_s21 = smov [#allocation2]   ;;  %s3423_s23 = smov [#allocation5]  }
   0x6   :  { %s32_s22 = sshll.u32 %s3422_s21, 4  ;;  %s44_s24 = sshll.u32 %s3423_s23, 4  ;;  %s33_s22 = int_to_ptr.vmem [resolvable:$true] %s32_s22  ;;  %s45_s24 = int_to_ptr.vmem [resolvable:$true] %s44_s24 }
   0x7   :  { %s3322_s25 = scalar_lea.vmem %s33_s22, 32  ;;  %p3327_p1 = scmp.lt.s32.totalorder %s33_s22, %s33_s22 }
   0x8   :  { %p3323_p0 = scmp.ne.s32.totalorder %s33_s22, %s3322_s25  ;;  %p3328_p2 = scmp.lt.s32.totalorder %s3322_s25, %s3322_s25 }
   0xa   :  { %p3329_p3 = por %p3328_p2, %p3327_p1 }
   0xc   :  { %p3330_p4 = pnand %p3329_p3, %p3323_p0 }
   0xe   :  { %3333 = shalt.err (!%p3330_p4)
}
   0xf   :  { %s4389_s28 = sld [smem:[#allocation15_spill]]  ;;  %s3342_s29 = scalar_lea.vmem %s45_s24, 64 }
  0x10   :  { %p3343_p5 = scmp.ne.s32.totalorder %s45_s24, %s3342_s29  ;;  %p3347_p6 = scmp.lt.s32.totalorder %s45_s24, %s45_s24 }
  0x11   :  { %p3348_p7 = scmp.lt.s32.totalorder %s3342_s29, %s3342_s29 }
  0x13   :  { %p3349_p8 = por %p3348_p7, %p3347_p6 }
  0x15   :  { %35 = dma.hbm_to_vmem [thread:$0]  %s4389_s28, 32, %s33_s22, [#allocation3]  }
  0x16   :  { %p3350_p9 = pnand %p3349_p8, %p3343_p5 }
  0x18   :  { %3353 = shalt.err (!%p3350_p9)
}
  0x19   :  { %47 = dma.hbm_to_vmem [thread:$0]  %s4373_s2, 64, %s45_s24, [#allocation6]  }
  0x1a   :  { %3414 = dma.done.wait [#allocation3], 32  }
  0x1b   :  { %3415 = vsyncadd [#allocation3], 4294967264 }
  0x1c   :  { %3416 = dma.done.wait [#allocation6], 64  }
  0x1d   :  { %3417 = vsyncadd [#allocation6], 4294967232  ;;  %v3424_v0 = vmov 0.0   ;;  %vm3425_vm0 = vmmov 0   ;;  %v3541_v1 = vld [vmem:[%s4375_s4 + $0x38] sm:$0xff]   ;;  %v3547_v2 = vld [vmem:[%s4375_s4 + $0x30] sm:$0xff]  }
  0x1e   :  { %2767 = vmatprep.subr.bf16.mxu0 %v3424_v0  ;;  %2783 = vmatprep.mubr.msk.bf16.mxu0 %vm3425_vm0, %v3424_v0  ;;  %v3554_v3 = vld [vmem:[%s4375_s4 + $0x28] sm:$0xff]   ;;  %v3566_v5 = vld [vmem:[%s4375_s4 + $0x20] sm:$0xff]   ;;  %v3581_v8 = vld [vmem:[%s4375_s4 + $0x18] sm:$0xff]   ;;  %vm249_vm1 = vcmask 261120   ;;  %vm348_vm2 = vcmask 76800   ;;  %v3426_v36 = vmov 2  }
  0x1f   :  { %2787 = vmatprep.subr.bf16.mxu1 %v3424_v0  ;;  %2791 = vmatprep.mubr.msk.bf16.mxu1 %vm3425_vm0, %v3424_v0  ;;  %v3560_v4 = vld [vmem:[%s4377_s6 + $0x8] sm:$0xff]   ;;  %v3571_v6 = vld [vmem:[%s4377_s6] sm:$0xff]   ;;  %v3597_v11 = vld [vmem:[%s4375_s4 + $0x10] sm:$0xff]   ;;  %v3427_v37 = vmov 0   ;;  %v3428_v41 = vmov 1   ;;  %v3429_v42 = vmov 3  }
  0x20   :  { %2768 = vmatpush3.bf16.msra.mxu0 %v3541_v1  ;;  %2788 = vmatpush3.bf16.msra.mxu1 %v3560_v4  ;;  %v233_v7 = vld [vmem:[%s4372_s1] sm:$0xf]  ;;  %v3587_v9 = vld [vmem:[%s4376_s5 + $0x8] sm:$0xff]   ;;  %v3430_v43 = vmov 4   ;;  %v3431_v45 = vmov 5   ;;  %v3432_v47 = vmov 6  }
  0x21   :  { %2769 = vmatprep.subr.bf16.mxu0 %v3424_v0  ;;  %2789 = vmatprep.subr.bf16.mxu1 %v3424_v0  ;;  %v3590_v10 = vpack.c.bf16 %v233_v7, %v233_v7  ;;  %v3608_v12 = vld [vmem:[%s4376_s5] sm:$0xff]   ;;  %v3617_v13 = vld [vmem:[%s4375_s4 + $0x8] sm:$0xff]   ;;  %v3690_v61 = vld [vmem:[%s4374_s3 + $0x10] sm:$0xf]  ;;  %s3433_s23 = smov 64   ;;  %s3434_s24 = smov 32  }
  0x22   :  { %v3626_v14 = vld [vmem:[%s4375_s4] sm:$0xff]   ;;  %3168 = vset.pattern.permute.xlu0 %v3426_v36  ;;  %3166 = vset.pattern.permute.xlu1 %v3427_v37  ;;  %v3650_v44 = vld [vmem:[%s4379_s8 + $0x8] sm:$0xff]   ;;  %v3696_v7 = vld [vmem:[%s4374_s3 + $0x14] sm:$0xf]  ;;  %vm708_vm3 = vcmask 1043456   ;;  %s3437_s17 = smov [#allocation8]  }
  0x23   :  { %v144_v15 = vld [vmem:[#allocation2] sm:$0x3]  ;;  %v3667_v50 = vld [vmem:[%s4374_s3 + $0x4] sm:$0xf]  ;;  %v3679_v55 = vld [vmem:[%s4374_s3 + $0x8] sm:$0xf] }
  0x24   :  { %2770 = vmatpush3.bf16.msra.mxu0 %v3547_v2  ;;  %2790 = vmatpush3.bf16.msra.mxu1 %v3571_v6  ;;  %v3658_v46 = vld [vmem:[%s4379_s8] sm:$0xff]   ;;  %v3684_v58 = vld [vmem:[%s4374_s3 + $0xc] sm:$0xf]  ;;  %s2514_s18 = sshll.u32 %s3437_s17, 4  ;;  %s2515_s18 = int_to_ptr.vmem [resolvable:$true] %s2514_s18 }
  0x25   :  { %2771 = vmatprep.subr.bf16.mxu0 %v3424_v0  ;;  %2795 = vmatprep.subr.bf16.mxu1 %v3424_v0  ;;  %v3672_v51 = vld [vmem:[%s4374_s3] sm:$0xf]  ;;  %s3354_s1 = scalar_lea.vmem %s2515_s18, 64  ;;  %p3359_p11 = scmp.lt.s32.totalorder %s2515_s18, %s2515_s18 }
  0x26   :  { %p3355_p10 = scmp.ne.s32.totalorder %s2515_s18, %s3354_s1  ;;  %p3360_p12 = scmp.lt.s32.totalorder %s3354_s1, %s3354_s1 }
  0x27   :  { %2792 = vmatmul.mubr.msk.bf16.vlgmr.msra.gmra.mxu1 %vm249_vm1, %v3590_v10 }
  0x28   :  { %2772 = vmatpush3.bf16.msra.mxu0 %v3554_v3  ;;  %2796 = vmatpush3.bf16.msra.mxu1 %v3587_v9  ;;  %p3361_p13 = por %p3360_p12, %p3359_p11 }
  0x29   :  { %2773 = vmatprep.subr.bf16.mxu0 %v3424_v0  ;;  %2797 = vmatprep.subr.bf16.mxu1 %v3424_v0 }
  0x2a   :  { %2799 = vmatprep.mubr.msk.bf16.mxu1 %vm3425_vm0, %v3424_v0  ;;  %p3362_p0 = pnand %p3361_p13, %p3355_p10 }
  0x2c   :  { %2774 = vmatpush3.bf16.msra.mxu0 %v3566_v5  ;;  %2798 = vmatpush3.bf16.msra.mxu1 %v3608_v12 }
  0x2d   :  { %2775 = vmatprep.subr.bf16.mxu0 %v3424_v0  ;;  %2803 = vmatprep.subr.bf16.mxu1 %v3424_v0 }
  0x30   :  { %2776 = vmatpush3.bf16.msra.mxu0 %v3581_v8 }
  0x31   :  { %2777 = vmatprep.subr.bf16.mxu0 %v3424_v0 }
  0x34   :  { %2778 = vmatpush3.bf16.msra.mxu0 %v3597_v11 }
  0x35   :  { %2779 = vmatprep.subr.bf16.mxu0 %v3424_v0 }
  0x38   :  { %2780 = vmatpush3.bf16.msra.mxu0 %v3617_v13 }
  0x39   :  { %2781 = vmatprep.subr.bf16.mxu0 %v3424_v0 }
  0x3c   :  { %2782 = vmatpush3.bf16.msra.mxu0 %v3626_v14 }
  0x3d   :  { %2819 = vmatprep.subr.bf16.mxu0 %v3424_v0 }
  0x3f   :  { %2784 = vmatmul.mubr.bf16.vlgmr.msra.gmra.mxu0 %v144_v15 }
  0x40   :  { %2823 = vmatprep.mubr.msk.bf16.mxu0 %vm3425_vm0, %v3424_v0 }
  0xe7   :  { %v287_v16 = vpop.f32.mrf.mxu1 }
  0xe9   :  { %v2793_v17 = vpop.f32.mrf.mxu1 }
  0xeb   :  { %v290_v18 = vpop.f32.mrf.mxu1 }
  0xed   :  { %v2794_v19 = vpop.f32.mrf.mxu1 }
  0xee   :  { %v3703_v19 = vld [vmem:[%s4374_s3 + $0x18] sm:$0xf] }
  0xff   :  { %v227_v20 = vpop.f32.mrf.mxu0 }
 0x100   :  { %v3633_v21 = vpack.c.bf16 %v227_v20, %v227_v20 }
 0x101   :  { %v2785_v22 = vpop.f32.mrf.mxu0 }
 0x102   :  { %2800 = vmatmul.mubr.msk.bf16.vlgmr.msra.gmra.mxu1 %vm249_vm1, %v3633_v21 }
 0x103   :  { %v230_v23 = vpop.f32.mrf.mxu0  ;;  %2807 = vmatprep.mubr.msk.bf16.mxu1 %vm3425_vm0, %v3424_v0  ;;  %2804 = vmatpush3.bf16.msra.mxu1 %v3650_v44 }
 0x104   :  { %2805 = vmatprep.subr.bf16.mxu1 %v3424_v0 }
 0x105   :  { %v2786_v24 = vpop.f32.mrf.mxu0 }
 0x107   :  { %2806 = vmatpush3.bf16.msra.mxu1 %v3658_v46 }
 0x108   :  { %2811 = vmatprep.subr.bf16.mxu1 %v3424_v0 }
 0x1c2   :  { %v342_v25 = vpop.f32.mrf.mxu1 }
 0x1c3   :  { %v343_v26 = vadd.f32 %v342_v25, %v287_v16 }
 0x1c4   :  { %v2801_v27 = vpop.f32.mrf.mxu1 }
 0x1c5   :  { %v349_v28 = vsel %vm348_vm2, %v343_v26, -inf }
 0x1c6   :  { %350 = vmax.xlane.f32.xlu0 %v349_v28  ;;  %v345_v29 = vpop.f32.mrf.mxu1  ;;  %v3716_v28 = vld [vmem:[%s4378_s7] sm:$0xff]  }
 0x1c7   :  { %v3730_v29 = vld [vmem:[%s4381_s10 + $0x8] sm:$0xff]  }
 0x1c8   :  { %v2802_v30 = vpop.f32.mrf.mxu1  ;;  %2820 = vmatpush3.bf16.msra.mxu0 %v3730_v29 }
 0x1c9   :  { %2821 = vmatprep.subr.bf16.mxu0 %v3424_v0  ;;  %v3737_v30 = vld [vmem:[%s4381_s10] sm:$0xff]  }
 0x1cc   :  { %2822 = vmatpush3.bf16.msra.mxu0 %v3737_v30 }
 0x1cd   :  { %2835 = vmatprep.subr.bf16.mxu0 %v3424_v0 }
 0x1cf   :  { %2824 = vmatmul.mubr.msk.bf16.vlgmr.msra.gmra.mxu0 %vm249_vm1, %v3590_v10 }
 0x1d0   :  { %2839 = vmatprep.mubr.msk.bf16.mxu0 %vm3425_vm0, %v3424_v0 }
 0x24f   :  { %v351_v31 = vpop.xlane.xlu0 %350 }
 0x250   :  { %v352_v32 = vsub.f32 %v343_v26, %v351_v31  ;;  %v3709_v26 = vld [vmem:[%s4378_s7 + $0x8] sm:$0xff]   ;;  %v3753_v31 = vld [vmem:[%s4380_s9] sm:$0xff]  }
 0x252   :  { %v353_v33 = vmul.f32 1.442695, %v352_v32 }
 0x254   :  { %3223 = vpow2.f32 %v353_v33 }
 0x261   :  { %v3224_v34 = vpop.eup %3223 }
 0x262   :  { %v355_v35 = vsel %vm348_vm2, %v3224_v34, 0.0 }
 0x263   :  { %356 = vadd.xlane.f32.xlu0 %v355_v35 }
 0x2ec   :  { %v357_v38 = vpop.xlane.xlu0 %356 }
 0x2ed   :  { %3225 = vrcp.f32 %v357_v38 }
 0x2fa   :  { %v3226_v39 = vpop.eup %3225 }
 0x2fb   :  { %v359_v40 = vmul.f32 %v3226_v39, %v3224_v34 }
 0x2fd   :  { %373 = vperm.xlu0 %3168, %v359_v40   ;;  %362 = vperm.xlu1 %3166, %v359_v40  }
 0x301   :  { %3167 = vset.pattern.permute.xlu1 %v3428_v41  ;;  %3173 = vset.pattern.permute.xlu0 %v3427_v37 }
 0x302   :  { %367 = vperm.xlu1 %3167, %v359_v40  }
 0x306   :  { %3169 = vset.pattern.permute.xlu1 %v3429_v42 }
 0x307   :  { %379 = vperm.xlu1 %3169, %v359_v40  }
 0x30b   :  { %3170 = vset.pattern.permute.xlu1 %v3430_v43 }
 0x30c   :  { %385 = vperm.xlu1 %3170, %v359_v40  }
 0x310   :  { %3171 = vset.pattern.permute.xlu1 %v3431_v45 }
 0x311   :  { %391 = vperm.xlu1 %3171, %v359_v40  }
 0x315   :  { %3172 = vset.pattern.permute.xlu1 %v3432_v47 }
 0x316   :  { %397 = vperm.xlu1 %3172, %v359_v40  }
 0x31a   :  { %3174 = vset.pattern.permute.xlu1 %v3428_v41 }
 0x378   :  { %v363_v48 = vpop.permute.xlu1 %362  ;;  %v374_v56 = vpop.permute.xlu0 %373 }
 0x379   :  { %v365_v54 = vmul.f32 %v363_v48, %v3672_v51  ;;  %v376_v60 = vmul.f32 %v374_v56, %v3679_v55 }
 0x37d   :  { %v368_v49 = vpop.permute.xlu1 %367 }
 0x37e   :  { %v370_v52 = vmul.f32 %v368_v49, %v3667_v50 }
 0x380   :  { %v371_v57 = vadd.f32 %v370_v52, %v365_v54 }
 0x382   :  { %v380_v53 = vpop.permute.xlu1 %379  ;;  %v377_v62 = vadd.f32 %v376_v60, %v371_v57 }
 0x383   :  { %v382_v63 = vmul.f32 %v380_v53, %v3684_v58  ;;  %v558_v53 = vpop.f32.mrf.mxu0 }
 0x385   :  { %v383_v17 = vadd.f32 %v382_v63, %v377_v62  ;;  %v2825_v54 = vpop.f32.mrf.mxu0 }
 0x386   :  { %v3823_v54 = vld [vmem:[%s4384_s13] ss:$0 sm:$0xff] }
 0x387   :  { %v386_v59 = vpop.permute.xlu1 %385  ;;  %v561_v56 = vpop.f32.mrf.mxu0 }
 0x388   :  { %v388_v15 = vmul.f32 %v386_v59, %v3690_v61  ;;  %v3781_v59 = vld [vmem:[%s4382_s11] ss:$0 sm:$0xff] }
 0x389   :  { %v2826_v57 = vpop.f32.mrf.mxu0 }
 0x38a   :  { %v389_v20 = vadd.f32 %v388_v15, %v383_v17 }
 0x38c   :  { %v392_v16 = vpop.permute.xlu1 %391 }
 0x38d   :  { %v394_v18 = vmul.f32 %v392_v16, %v3696_v7 }
 0x38f   :  { %v395_v23 = vadd.f32 %v394_v18, %v389_v20  ;;  %v234_v20 = vld [vmem:[#allocation5] sm:$0xf] }
 0x391   :  { %v398_v22 = vpop.permute.xlu1 %397 }
 0x392   :  { %v400_v24 = vmul.f32 %v398_v22, %v3703_v19 }
 0x394   :  { %v401_v25 = vadd.f32 %v400_v24, %v395_v23 }
 0x396   :  { %v402_v27 = vpack.c.bf16 %v401_v25, %v401_v25 }
 0x398   :  { %2808 = vmatmul.mubr.msk.bf16.vlgmr.msra.gmra.mxu1 %vm249_vm1, %v402_v27 }
 0x399   :  { %2812 = vmatpush3.bf16.msra.mxu1 %v3709_v26  ;;  %2815 = vmatprep.mubr.msk.bf16.mxu1 %vm3425_vm0, %v3424_v0 }
 0x39a   :  { %2813 = vmatprep.subr.bf16.mxu1 %v3424_v0 }
 0x39d   :  { %2814 = vmatpush3.bf16.msra.mxu1 %v3716_v28 }
 0x39e   :  { %2827 = vmatprep.subr.bf16.mxu1 %v3424_v0 }
 0x3a0   :  { %2816 = vmatmul.mubr.msk.bf16.vlgmr.msra.gmra.mxu1 %vm249_vm1, %v3633_v21  ;;  %v3743_v21 = vld [vmem:[%s4380_s9 + $0x8] sm:$0xff]  }
 0x3a1   :  { %2831 = vmatprep.mubr.msk.bf16.mxu1 %vm3425_vm0, %v3424_v0  ;;  %2828 = vmatpush3.bf16.msra.mxu1 %v3743_v21 }
 0x3a2   :  { %2829 = vmatprep.subr.bf16.mxu1 %v3424_v0 }
 0x3a5   :  { %2830 = vmatpush3.bf16.msra.mxu1 %v3753_v31 }
 0x3a6   :  { %2843 = vmatprep.subr.bf16.mxu1 %v3424_v0 }
 0x458   :  { %v452_v32 = vpop.f32.mrf.mxu1 }
 0x45a   :  { %v2809_v33 = vpop.f32.mrf.mxu1 }
 0x45c   :  { %v455_v34 = vpop.f32.mrf.mxu1 }
 0x45e   :  { %v2810_v35 = vpop.f32.mrf.mxu1 }
 0x460   :  { %v504_v38 = vpop.f32.mrf.mxu1 }
 0x461   :  { %v505_v10 = vadd.f32 %v504_v38, %v452_v32 }
 0x462   :  { %v2817_v39 = vpop.f32.mrf.mxu1 }
 0x463   :  { %v510_v40 = vmax.f32 %v505_v10, 0.0  ;;  %v3793_v10 = vld [vmem:[%s4383_s12 + $0x8] sm:$0xff]   ;;  %v3799_v39 = vld [vmem:[%s4383_s12] sm:$0xff]  }
 0x464   :  { %v507_v48 = vpop.f32.mrf.mxu1  ;;  %2836 = vmatpush3.bf16.msra.mxu0 %v3793_v10 }
 0x465   :  { %v511_v49 = vpack.c.bf16 %v510_v40, %v510_v40  ;;  %2837 = vmatprep.subr.bf16.mxu0 %v3424_v0 }
 0x466   :  { %v2818_v52 = vpop.f32.mrf.mxu1 }
 0x467   :  { %2832 = vmatmul.mubr.msk.bf16.vlgmr.msra.gmra.mxu1 %vm249_vm1, %v511_v49 }
 0x468   :  { %2844 = vmatpush3.bf16.msra.mxu1 %v3541_v1  ;;  %2859 = vmatprep.mubr.msk.bf16.mxu1 %vm3425_vm0, %v3424_v0 }
 0x469   :  { %2845 = vmatprep.subr.bf16.mxu1 %v3424_v0  ;;  %2838 = vmatpush3.bf16.msra.mxu0 %v3799_v39 }
 0x46a   :  { %2863 = vmatprep.subr.bf16.mxu0 %v3424_v0 }
 0x46c   :  { %2846 = vmatpush3.bf16.msra.mxu1 %v3547_v2 }
 0x46d   :  { %2847 = vmatprep.subr.bf16.mxu1 %v3424_v0 }
 0x470   :  { %2848 = vmatpush3.bf16.msra.mxu1 %v3554_v3 }
 0x471   :  { %2849 = vmatprep.subr.bf16.mxu1 %v3424_v0 }
 0x474   :  { %2850 = vmatpush3.bf16.msra.mxu1 %v3566_v5 }
 0x475   :  { %2851 = vmatprep.subr.bf16.mxu1 %v3424_v0 }
 0x478   :  { %2852 = vmatpush3.bf16.msra.mxu1 %v3581_v8 }
 0x479   :  { %2853 = vmatprep.subr.bf16.mxu1 %v3424_v0 }
 0x47c   :  { %2854 = vmatpush3.bf16.msra.mxu1 %v3597_v11 }
 0x47d   :  { %2855 = vmatprep.subr.bf16.mxu1 %v3424_v0 }
 0x480   :  { %2856 = vmatpush3.bf16.msra.mxu1 %v3617_v13 }
 0x481   :  { %2857 = vmatprep.subr.bf16.mxu1 %v3424_v0 }
 0x484   :  { %2858 = vmatpush3.bf16.msra.mxu1 %v3626_v14 }
 0x485   :  { %2895 = vmatprep.subr.bf16.mxu1 %v3424_v0 }
 0x527   :  { %v613_v60 = vpop.f32.mrf.mxu1 }
 0x528   :  { %v614_v62 = vadd.f32 %v613_v60, %v558_v53 }
 0x529   :  { %v2833_v63 = vpop.f32.mrf.mxu1 }
 0x52a   :  { %v619_v15 = vadd.f32 %v3781_v59, %v614_v62 }
 0x52b   :  { %v616_v16 = vpop.f32.mrf.mxu1 }
 0x52c   :  { %3227 = vtanh.f32 %v619_v15  ;;  %v2569_v22 = vmul.f32 -1.442695, %v619_v15 }
 0x52d   :  { %v2834_v17 = vpop.f32.mrf.mxu1 }
 0x52e   :  { %3229 = vpow2.f32 %v2569_v22  ;;  %v142_v22 = vlaneseq }
 0x539   :  { %v3228_v18 = vpop.eup %3227 }
 0x53a   :  { %633 = vrot.lane.b32.xlu1 %v3228_v18, %s3433_s23 }
 0x53b   :  { %v3230_v23 = vpop.eup %3229 }
 0x53c   :  { %v623_v24 = vadd.f32 1.0, %v3230_v23  ;;  %v3827_v23 = vand.u32 127, %v142_v22 }
 0x53e   :  { %628 = vrot.lane.b32.xlu1 %v234_v20, %s3434_s24  ;;  %3231 = vrcp.f32 %v623_v24 }
 0x54b   :  { %v3232_v25 = vpop.eup %3231 }
 0x5ac   :  { %v634_v27 = vpop.permute.xlu1 %633 }
 0x5ad   :  { %v636_v32 = vmul.f32 %v3232_v25, %v634_v27 }
 0x5af   :  { %638 = vrot.lane.b32.xlu1 %v636_v32, %s3434_s24 }
 0x5b0   :  { %v629_v33 = vpop.permute.xlu1 %628 }
 0x5b1   :  { %v631_v34 = vmul.f32 %v3232_v25, %v629_v33 }
 0x621   :  { %v639_v35 = vpop.permute.xlu1 %638 }
 0x622   :  { %v3787_v38 = vadd.f32 %v639_v35, %v631_v34 }
 0x624   :  { %3233 = vtanh.f32 %v3787_v38 }
 0x631   :  { %v3234_v40 = vpop.eup %3233 }
 0x632   :  { %644 = vrot.lane.b32.xlu1 %v3234_v40, %s3433_s23 }
 0x6a4   :  { %v645_v48 = vpop.permute.xlu1 %644 }
 0x6a5   :  { %v647_v49 = vmul.f32 %v3232_v25, %v645_v48 }
 0x6a7   :  { %v648_v52 = vpack.c.bf16 %v647_v49, %v647_v49 }
 0x6a9   :  { %650 = vrot.lane.b32.xlu1 %v648_v52, %s3434_s24 }
 0x71b   :  { %v651_v53 = vpop.permute.xlu1 %650 }
 0x71c   :  { %2840 = vmatmul.mubr.msk.bf16.vlgmr.msra.gmra.mxu0 %vm249_vm1, %v651_v53 }
 0x71d   :  { %2864 = vmatpush3.bf16.msra.mxu0 %v3560_v4  ;;  %2867 = vmatprep.mubr.msk.bf16.mxu0 %vm3425_vm0, %v3424_v0 }
 0x71e   :  { %2865 = vmatprep.subr.bf16.mxu0 %v3424_v0 }
 0x721   :  { %2866 = vmatpush3.bf16.msra.mxu0 %v3571_v6 }
 0x722   :  { %2871 = vmatprep.subr.bf16.mxu0 %v3424_v0 }
 0x724   :  { %2868 = vmatmul.mubr.msk.bf16.vlgmr.msra.gmra.mxu0 %vm249_vm1, %v651_v53 }
 0x725   :  { %2872 = vmatpush3.bf16.msra.mxu0 %v3587_v9  ;;  %2875 = vmatprep.mubr.msk.bf16.mxu0 %vm3425_vm0, %v3424_v0 }
 0x726   :  { %2873 = vmatprep.subr.bf16.mxu0 %v3424_v0 }
 0x729   :  { %2874 = vmatpush3.bf16.msra.mxu0 %v3608_v12 }
 0x72a   :  { %2879 = vmatprep.subr.bf16.mxu0 %v3424_v0 }
 0x7dc   :  { %v701_v56 = vpop.f32.mrf.mxu0 }
 0x7dd   :  { %v702_v57 = vadd.f32 %v3823_v54, %v701_v56 }
 0x7de   :  { %v2841_v60 = vpop.f32.mrf.mxu0 }
 0x7df   :  { %707 = vst [vmem:[#allocation7] sm:$0xf] %v702_v57  ;;  %v709_v62 = vsel %vm708_vm3, %v702_v57, -inf }
 0x7e0   :  { %710 = vmax.xlane.f32.xlu1 %v709_v62  ;;  %v704_v63 = vpop.f32.mrf.mxu0 }
 0x7e2   :  { %v2842_v15 = vpop.f32.mrf.mxu0 }
 0x7e4   :  { %v808_v16 = vpop.f32.mrf.mxu0 }
 0x7e6   :  { %v2869_v17 = vpop.f32.mrf.mxu0 }
 0x7e8   :  { %v811_v18 = vpop.f32.mrf.mxu0 }
 0x7ea   :  { %v2870_v20 = vpop.f32.mrf.mxu0 }
 0x869   :  { %v711_v24 = vpop.xlane.xlu1 %710 }
 0x86a   :  { %vm712_vm4 = vcmp.eq.f32.partialorder %v702_v57, %v711_v24  ;;  %v3435_v57 = vmov 1.0|1.0  }
 0x86b   :  { %v713_v25 = vsel %vm712_vm4, %v3827_v23, 128 }
 0x86c   :  { %v714_v27 = vsel %vm708_vm3, %v713_v25, 2147483647 }
 0x86d   :  { %v716_v32 = vshra.s32 %v714_v27, 16  ;;  %v715_v34 = vand.u32 65535, %v714_v27 }
 0x86f   :  { %v718_v33 = vcvt.s32.f32 %v716_v32  ;;  %v717_v40 = vcvt.s32.f32 %v715_v34 }
 0x871   :  { %719 = vmin.xlane.f32.xlu0 %v718_v33 }
 0x8fa   :  { %v720_v35 = vpop.xlane.xlu0 %719 }
 0x8fb   :  { %vm721_vm5 = vcmp.eq.f32.partialorder %v718_v33, %v720_v35  ;;  %v726_v49 = vcvt.f32.s32 %v720_v35 }
 0x8fc   :  { %v722_v48 = vsel %vm721_vm5, %v717_v40, inf }
 0x8fd   :  { %723 = vmin.xlane.f32.xlu1 %v722_v48  ;;  %v727_v56 = vshll.u32 %v726_v49, 16 }
 0x986   :  { %v724_v52 = vpop.xlane.xlu1 %723 }
 0x987   :  { %v725_v60 = vcvt.f32.s32 %v724_v52 }
 0x989   :  { %v728_v62 = vadd.s32 %v727_v56, %v725_v60 }
 0x98b   :  { %vm729_vm6 = vcmp.eq.s32.totalorder %v3827_v23, %v728_v62 }
 0x98c   :  { %vm2574_vm7 = vmpackc.low %vm729_vm6, %vm729_vm6 }
 0x98d   :  { %2860 = vmatmul.mubr.msk.bf16.vlgmr.msra.gmra.mxu1 %vm2574_vm7, %v3435_v57 }
 0x98e   :  { %2896 = vmatpush3.bf16.msra.mxu1 %v3730_v29  ;;  %2899 = vmatprep.mubr.msk.bf16.mxu1 %vm3425_vm0, %v3424_v0 }
 0x98f   :  { %2897 = vmatprep.subr.bf16.mxu1 %v3424_v0 }
 0x992   :  { %2898 = vmatpush3.bf16.msra.mxu1 %v3737_v30 }
 0x993   :  { %2911 = vmatprep.subr.bf16.mxu1 %v3424_v0 }
 0x995   :  { %2900 = vmatmul.mubr.msk.bf16.vlgmr.msra.gmra.mxu1 %vm249_vm1, %v651_v53 }
 0x996   :  { %2912 = vmatpush3.bf16.msra.mxu1 %v3793_v10  ;;  %2915 = vmatprep.mubr.msk.bf16.mxu1 %vm3425_vm0, %v3424_v0 }
 0x997   :  { %2913 = vmatprep.subr.bf16.mxu1 %v3424_v0 }
 0x99a   :  { %2914 = vmatpush3.bf16.msra.mxu1 %v3799_v39 }
 0x99b   :  { %2939 = vmatprep.subr.bf16.mxu1 %v3424_v0 }
 0xa4d   :  { %v767_v63 = vpop.f32.mrf.mxu1 }
 0xa4e   :  { %v3846_v15 = vpack.c.bf16 %v767_v63, %v767_v63 }
 0xa4f   :  { %v2861_v17 = vpop.f32.mrf.mxu1 }
 0xa50   :  { %2876 = vmatmul.mubr.msk.bf16.vlgmr.msra.gmra.mxu0 %vm249_vm1, %v3846_v15 }
 0xa51   :  { %v770_v18 = vpop.f32.mrf.mxu1  ;;  %2880 = vmatpush3.bf16.msra.mxu0 %v3650_v44  ;;  %2883 = vmatprep.mubr.msk.bf16.mxu0 %vm3425_vm0, %v3424_v0 }
 0xa52   :  { %2881 = vmatprep.subr.bf16.mxu0 %v3424_v0 }
 0xa53   :  { %v2862_v53 = vpop.f32.mrf.mxu1 }
 0xa55   :  { %v3854_v20 = vpop.f32.mrf.mxu1  ;;  %2882 = vmatpush3.bf16.msra.mxu0 %v3658_v46 }
 0xa56   :  { %2887 = vmatprep.subr.bf16.mxu0 %v3424_v0 }
 0xa57   :  { %v2901_v22 = vpop.f32.mrf.mxu1 }
 0xa59   :  { %v1033_v24 = vpop.f32.mrf.mxu1 }
 0xa5b   :  { %v2902_v25 = vpop.f32.mrf.mxu1 }
 0xb10   :  { %v851_v27 = vpop.f32.mrf.mxu0 }
 0xb11   :  { %v852_v32 = vadd.f32 %v851_v27, %v808_v16 }
 0xb12   :  { %v2877_v33 = vpop.f32.mrf.mxu0 }
 0xb13   :  { %v857_v34 = vsel %vm348_vm2, %v852_v32, -inf }
 0xb14   :  { %858 = vmax.xlane.f32.xlu0 %v857_v34  ;;  %v854_v35 = vpop.f32.mrf.mxu0 }
 0xb16   :  { %v2878_v40 = vpop.f32.mrf.mxu0 }
 0xb9d   :  { %v859_v48 = vpop.xlane.xlu0 %858 }
 0xb9e   :  { %v860_v49 = vsub.f32 %v852_v32, %v859_v48 }
 0xba0   :  { %v861_v52 = vmul.f32 1.442695, %v860_v49 }
 0xba2   :  { %3235 = vpow2.f32 %v861_v52 }
 0xbaf   :  { %v3236_v56 = vpop.eup %3235 }
 0xbb0   :  { %v863_v60 = vsel %vm348_vm2, %v3236_v56, 0.0 }
 0xbb1   :  { %864 = vadd.xlane.f32.xlu1 %v863_v60 }
 0xc3a   :  { %v865_v62 = vpop.xlane.xlu1 %864 }
 0xc3b   :  { %3237 = vrcp.f32 %v865_v62 }
 0xc48   :  { %v3238_v63 = vpop.eup %3237 }
 0xc49   :  { %v867_v17 = vmul.f32 %v3238_v63, %v3236_v56 }
 0xc4b   :  { %875 = vperm.xlu1 %3174, %v867_v17   ;;  %870 = vperm.xlu0 %3173, %v867_v17  }
 0xc4f   :  { %3175 = vset.pattern.permute.xlu1 %v3426_v36 }
 0xc50   :  { %881 = vperm.xlu1 %3175, %v867_v17  }
 0xc54   :  { %3176 = vset.pattern.permute.xlu1 %v3429_v42 }
 0xc55   :  { %887 = vperm.xlu1 %3176, %v867_v17  }
 0xc59   :  { %3177 = vset.pattern.permute.xlu1 %v3430_v43 }
 0xc5a   :  { %893 = vperm.xlu1 %3177, %v867_v17  }
 0xc5e   :  { %3178 = vset.pattern.permute.xlu1 %v3431_v45 }
 0xc5f   :  { %899 = vperm.xlu1 %3178, %v867_v17  }
 0xc63   :  { %3179 = vset.pattern.permute.xlu1 %v3432_v47 }
 0xc64   :  { %905 = vperm.xlu1 %3179, %v867_v17  }
 0xc68   :  { %3180 = vset.pattern.permute.xlu1 %v3428_v41 }
 0xcc6   :  { %v876_v16 = vpop.permute.xlu1 %875  ;;  %v871_v22 = vpop.permute.xlu0 %870 }
 0xcc7   :  { %v878_v24 = vmul.f32 %v876_v16, %v3667_v50  ;;  %v873_v25 = vmul.f32 %v871_v22, %v3672_v51 }
 0xcc9   :  { %v879_v33 = vadd.f32 %v878_v24, %v873_v25 }
 0xccb   :  { %v882_v18 = vpop.permute.xlu1 %881 }
 0xccc   :  { %v884_v32 = vmul.f32 %v882_v18, %v3679_v55 }
 0xcce   :  { %v885_v35 = vadd.f32 %v884_v32, %v879_v33 }
 0xcd0   :  { %v888_v53 = vpop.permute.xlu1 %887 }
 0xcd1   :  { %v890_v34 = vmul.f32 %v888_v53, %v3684_v58 }
 0xcd3   :  { %v891_v49 = vadd.f32 %v890_v34, %v885_v35 }
 0xcd5   :  { %v894_v27 = vpop.permute.xlu1 %893 }
 0xcd6   :  { %v896_v40 = vmul.f32 %v894_v27, %v3690_v61 }
 0xcd8   :  { %v897_v56 = vadd.f32 %v896_v40, %v891_v49 }
 0xcda   :  { %v900_v48 = vpop.permute.xlu1 %899 }
 0xcdb   :  { %v902_v52 = vmul.f32 %v900_v48, %v3696_v7 }
 0xcdd   :  { %v903_v62 = vadd.f32 %v902_v52, %v897_v56 }
 0xcdf   :  { %v906_v60 = vpop.permute.xlu1 %905 }
 0xce0   :  { %v908_v63 = vmul.f32 %v906_v60, %v3703_v19 }
 0xce2   :  { %v909_v17 = vadd.f32 %v908_v63, %v903_v62 }
 0xce4   :  { %v910_v16 = vpack.c.bf16 %v909_v17, %v909_v17 }
 0xce6   :  { %2884 = vmatmul.mubr.msk.bf16.vlgmr.msra.gmra.mxu0 %vm249_vm1, %v910_v16 }
 0xce7   :  { %2888 = vmatpush3.bf16.msra.mxu0 %v3709_v26  ;;  %2891 = vmatprep.mubr.msk.bf16.mxu0 %vm3425_vm0, %v3424_v0 }
 0xce8   :  { %2889 = vmatprep.subr.bf16.mxu0 %v3424_v0 }
 0xceb   :  { %2890 = vmatpush3.bf16.msra.mxu0 %v3716_v28 }
 0xcec   :  { %2903 = vmatprep.subr.bf16.mxu0 %v3424_v0 }
 0xcee   :  { %2892 = vmatmul.mubr.msk.bf16.vlgmr.msra.gmra.mxu0 %vm249_vm1, %v3846_v15 }
 0xcef   :  { %2904 = vmatpush3.bf16.msra.mxu0 %v3743_v21  ;;  %2907 = vmatprep.mubr.msk.bf16.mxu0 %vm3425_vm0, %v3424_v0 }
 0xcf0   :  { %2905 = vmatprep.subr.bf16.mxu0 %v3424_v0 }
 0xcf3   :  { %2906 = vmatpush3.bf16.msra.mxu0 %v3753_v31 }
 0xcf4   :  { %2919 = vmatprep.subr.bf16.mxu0 %v3424_v0 }
 0xda6   :  { %v948_v18 = vpop.f32.mrf.mxu0 }
 0xda8   :  { %v2885_v53 = vpop.f32.mrf.mxu0 }
 0xdaa   :  { %v951_v22 = vpop.f32.mrf.mxu0 }
 0xdac   :  { %v2886_v24 = vpop.f32.mrf.mxu0 }
 0xdae   :  { %v988_v25 = vpop.f32.mrf.mxu0 }
 0xdaf   :  { %v989_v27 = vadd.f32 %v988_v25, %v948_v18 }
 0xdb0   :  { %v2893_v32 = vpop.f32.mrf.mxu0 }
 0xdb1   :  { %v994_v33 = vmax.f32 %v989_v27, 0.0 }
 0xdb2   :  { %v991_v15 = vpop.f32.mrf.mxu0 }
 0xdb3   :  { %v995_v34 = vpack.c.bf16 %v994_v33, %v994_v33 }
 0xdb4   :  { %v2894_v35 = vpop.f32.mrf.mxu0 }
 0xdb5   :  { %2908 = vmatmul.mubr.msk.bf16.vlgmr.msra.gmra.mxu0 %vm249_vm1, %v995_v34 }
 0xdb6   :  { %2920 = vmatpush3.bf16.msra.mxu0 %v3541_v1  ;;  %2935 = vmatprep.mubr.msk.bf16.mxu0 %vm3425_vm0, %v3424_v0 }
 0xdb7   :  { %2921 = vmatprep.subr.bf16.mxu0 %v3424_v0 }
 0xdba   :  { %2922 = vmatpush3.bf16.msra.mxu0 %v3547_v2 }
 0xdbb   :  { %2923 = vmatprep.subr.bf16.mxu0 %v3424_v0 }
 0xdbe   :  { %2924 = vmatpush3.bf16.msra.mxu0 %v3554_v3 }
 0xdbf   :  { %2925 = vmatprep.subr.bf16.mxu0 %v3424_v0 }
 0xdc2   :  { %2926 = vmatpush3.bf16.msra.mxu0 %v3566_v5 }
 0xdc3   :  { %2927 = vmatprep.subr.bf16.mxu0 %v3424_v0 }
 0xdc6   :  { %2928 = vmatpush3.bf16.msra.mxu0 %v3581_v8 }
 0xdc7   :  { %2929 = vmatprep.subr.bf16.mxu0 %v3424_v0 }
 0xdca   :  { %2930 = vmatpush3.bf16.msra.mxu0 %v3597_v11 }
 0xdcb   :  { %2931 = vmatprep.subr.bf16.mxu0 %v3424_v0 }
 0xdce   :  { %2932 = vmatpush3.bf16.msra.mxu0 %v3617_v13 }
 0xdcf   :  { %2933 = vmatprep.subr.bf16.mxu0 %v3424_v0 }
 0xdd2   :  { %2934 = vmatpush3.bf16.msra.mxu0 %v3626_v14 }
 0xdd3   :  { %2971 = vmatprep.subr.bf16.mxu0 %v3424_v0 }
 0xe75   :  { %v1073_v1 = vpop.f32.mrf.mxu0 }
 0xe76   :  { %v1074_v2 = vadd.f32 %v1073_v1, %v3854_v20 }
 0xe77   :  { %v2909_v3 = vpop.f32.mrf.mxu0 }
 0xe78   :  { %v1079_v5 = vadd.f32 %v3781_v59, %v1074_v2 }
 0xe79   :  { %v1076_v8 = vpop.f32.mrf.mxu0 }
 0xe7a   :  { %3239 = vtanh.f32 %v1079_v5  ;;  %v2582_v48 = vmul.f32 -1.442695, %v1079_v5 }
 0xe7b   :  { %v2910_v40 = vpop.f32.mrf.mxu0 }
 0xe7c   :  { %3241 = vpow2.f32 %v2582_v48 }
 0xe87   :  { %v3240_v11 = vpop.eup %3239 }
 0xe88   :  { %1089 = vrot.lane.b32.xlu1 %v3240_v11, %s3433_s23 }
 0xe89   :  { %v3242_v13 = vpop.eup %3241 }
 0xe8a   :  { %v1083_v49 = vadd.f32 1.0, %v3242_v13 }
 0xe8c   :  { %3243 = vrcp.f32 %v1083_v49 }
 0xe99   :  { %v3244_v14 = vpop.eup %3243 }
 0xe9a   :  { %v1087_v20 = vmul.f32 %v3244_v14, %v3787_v38 }
 0xefa   :  { %v1090_v52 = vpop.permute.xlu1 %1089 }
 0xefb   :  { %v1092_v56 = vmul.f32 %v3244_v14, %v1090_v52 }
 0xefd   :  { %1094 = vrot.lane.b32.xlu1 %v1092_v56, %s3434_s24 }
 0xf6f   :  { %v1095_v60 = vpop.permute.xlu1 %1094 }
 0xf70   :  { %v3912_v62 = vadd.f32 %v1095_v60, %v1087_v20 }
 0xf72   :  { %3245 = vtanh.f32 %v3912_v62 }
 0xf7f   :  { %v3246_v63 = vpop.eup %3245 }
 0xf80   :  { %1100 = vrot.lane.b32.xlu0 %v3246_v63, %s3433_s23 }
 0xff2   :  { %v1101_v17 = vpop.permute.xlu0 %1100 }
 0xff3   :  { %v1103_v16 = vmul.f32 %v3244_v14, %v1101_v17 }
 0xff5   :  { %v1104_v18 = vpack.c.bf16 %v1103_v16, %v1103_v16 }
 0xff7   :  { %1106 = vrot.lane.b32.xlu1 %v1104_v18, %s3434_s24 }
0x1069   :  { %v1107_v53 = vpop.permute.xlu1 %1106 }
0x106a   :  { %2916 = vmatmul.mubr.msk.bf16.vlgmr.msra.gmra.mxu1 %vm249_vm1, %v1107_v53 }
0x106b   :  { %2940 = vmatpush3.bf16.msra.mxu1 %v3560_v4  ;;  %2943 = vmatprep.mubr.msk.bf16.mxu1 %vm3425_vm0, %v3424_v0 }
0x106c   :  { %2941 = vmatprep.subr.bf16.mxu1 %v3424_v0 }
0x106f   :  { %2942 = vmatpush3.bf16.msra.mxu1 %v3571_v6 }
0x1070   :  { %2947 = vmatprep.subr.bf16.mxu1 %v3424_v0 }
0x1072   :  { %2944 = vmatmul.mubr.msk.bf16.vlgmr.msra.gmra.mxu1 %vm249_vm1, %v1107_v53 }
0x1073   :  { %2948 = vmatpush3.bf16.msra.mxu1 %v3587_v9  ;;  %2951 = vmatprep.mubr.msk.bf16.mxu1 %vm3425_vm0, %v3424_v0 }
0x1074   :  { %2949 = vmatprep.subr.bf16.mxu1 %v3424_v0 }
0x1077   :  { %2950 = vmatpush3.bf16.msra.mxu1 %v3608_v12 }
0x1078   :  { %2955 = vmatprep.subr.bf16.mxu1 %v3424_v0 }
0x112a   :  { %v1145_v4 = vpop.f32.mrf.mxu1 }
0x112b   :  { %v1146_v38 = vadd.f32 %v3823_v54, %v1145_v4 }
0x112c   :  { %v2917_v22 = vpop.f32.mrf.mxu1 }
0x112d   :  { %1152 = vst [vmem:[#allocation7 + $0x4] sm:$0xf] %v1146_v38  ;;  %v1153_v6 = vsel %vm708_vm3, %v1146_v38, -inf }
0x112e   :  { %1154 = vmax.xlane.f32.xlu0 %v1153_v6  ;;  %v1148_v24 = vpop.f32.mrf.mxu1 }
0x1130   :  { %v2918_v25 = vpop.f32.mrf.mxu1 }
0x1132   :  { %v1252_v9 = vpop.f32.mrf.mxu1 }
0x1134   :  { %v2945_v27 = vpop.f32.mrf.mxu1 }
0x1136   :  { %v1255_v32 = vpop.f32.mrf.mxu1 }
0x1138   :  { %v2946_v33 = vpop.f32.mrf.mxu1 }
0x11b7   :  { %v1155_v15 = vpop.xlane.xlu0 %1154 }
0x11b8   :  { %vm1156_vm8 = vcmp.eq.f32.partialorder %v1146_v38, %v1155_v15 }
0x11b9   :  { %v1157_v12 = vsel %vm1156_vm8, %v3827_v23, 128 }
0x11ba   :  { %v1158_v34 = vsel %vm708_vm3, %v1157_v12, 2147483647 }
0x11bb   :  { %v1160_v35 = vshra.s32 %v1158_v34, 16  ;;  %v1159_v2 = vand.u32 65535, %v1158_v34 }
0x11bd   :  { %v1162_v1 = vcvt.s32.f32 %v1160_v35  ;;  %v1161_v5 = vcvt.s32.f32 %v1159_v2 }
0x11bf   :  { %1163 = vmin.xlane.f32.xlu1 %v1162_v1 }
0x1248   :  { %v1164_v3 = vpop.xlane.xlu1 %1163 }
0x1249   :  { %vm1165_vm9 = vcmp.eq.f32.partialorder %v1162_v1, %v1164_v3  ;;  %v1170_v40 = vcvt.f32.s32 %v1164_v3 }
0x124a   :  { %v1166_v8 = vsel %vm1165_vm9, %v1161_v5, inf }
0x124b   :  { %1167 = vmin.xlane.f32.xlu0 %v1166_v8  ;;  %v1171_v48 = vshll.u32 %v1170_v40, 16 }
0x12d4   :  { %v1168_v11 = vpop.xlane.xlu0 %1167 }
0x12d5   :  { %v1169_v13 = vcvt.f32.s32 %v1168_v11 }
0x12d7   :  { %v1172_v49 = vadd.s32 %v1171_v48, %v1169_v13 }
0x12d9   :  { %vm1173_vm10 = vcmp.eq.s32.totalorder %v3827_v23, %v1172_v49 }
0x12da   :  { %vm2585_vm11 = vmpackc.low %vm1173_vm10, %vm1173_vm10 }
0x12db   :  { %2936 = vmatmul.mubr.msk.bf16.vlgmr.msra.gmra.mxu0 %vm2585_vm11, %v3435_v57 }
0x12dc   :  { %2972 = vmatpush3.bf16.msra.mxu0 %v3730_v29  ;;  %2975 = vmatprep.mubr.msk.bf16.mxu0 %vm3425_vm0, %v3424_v0 }
0x12dd   :  { %2973 = vmatprep.subr.bf16.mxu0 %v3424_v0 }
0x12e0   :  { %2974 = vmatpush3.bf16.msra.mxu0 %v3737_v30 }
0x12e1   :  { %2987 = vmatprep.subr.bf16.mxu0 %v3424_v0 }
0x12e3   :  { %2976 = vmatmul.mubr.msk.bf16.vlgmr.msra.gmra.mxu0 %vm249_vm1, %v1107_v53 }
0x12e4   :  { %2988 = vmatpush3.bf16.msra.mxu0 %v3793_v10  ;;  %2991 = vmatprep.mubr.msk.bf16.mxu0 %vm3425_vm0, %v3424_v0 }
0x12e5   :  { %2989 = vmatprep.subr.bf16.mxu0 %v3424_v0 }
0x12e8   :  { %2990 = vmatpush3.bf16.msra.mxu0 %v3799_v39 }
0x12e9   :  { %3015 = vmatprep.subr.bf16.mxu0 %v3424_v0 }
0x139b   :  { %v1211_v29 = vpop.f32.mrf.mxu0 }
0x139c   :  { %v3950_v14 = vpack.c.bf16 %v1211_v29, %v1211_v29 }
0x139d   :  { %v2937_v52 = vpop.f32.mrf.mxu0 }
0x139e   :  { %2952 = vmatmul.mubr.msk.bf16.vlgmr.msra.gmra.mxu1 %vm249_vm1, %v3950_v14 }
0x139f   :  { %v1214_v30 = vpop.f32.mrf.mxu0  ;;  %2956 = vmatpush3.bf16.msra.mxu1 %v3650_v44  ;;  %2959 = vmatprep.mubr.msk.bf16.mxu1 %vm3425_vm0, %v3424_v0 }
0x13a0   :  { %2957 = vmatprep.subr.bf16.mxu1 %v3424_v0 }
0x13a1   :  { %v2938_v56 = vpop.f32.mrf.mxu0 }
0x13a3   :  { %v3958_v20 = vpop.f32.mrf.mxu0  ;;  %2958 = vmatpush3.bf16.msra.mxu1 %v3658_v46 }
0x13a4   :  { %2963 = vmatprep.subr.bf16.mxu1 %v3424_v0 }
0x13a5   :  { %v2977_v60 = vpop.f32.mrf.mxu0 }
0x13a7   :  { %v1477_v63 = vpop.f32.mrf.mxu0 }
0x13a9   :  { %v2978_v17 = vpop.f32.mrf.mxu0 }
0x13aa   :  { %v3997_v17 = vld [vmem:[%s4375_s4 + $0x38] sm:$0xff]  }
0x145e   :  { %v1295_v16 = vpop.f32.mrf.mxu1 }
0x145f   :  { %v1296_v18 = vadd.f32 %v1295_v16, %v1252_v9  ;;  %v4013_v16 = vld [vmem:[%s4375_s4 + $0x28] sm:$0xff]  }
0x1460   :  { %v2953_v53 = vpop.f32.mrf.mxu1 }
0x1461   :  { %v1301_v44 = vsel %vm348_vm2, %v1296_v18, -inf  ;;  %v4027_v53 = vld [vmem:[%s4375_s4 + $0x18] sm:$0xff]  }
0x1462   :  { %1302 = vmax.xlane.f32.xlu0 %v1301_v44  ;;  %v1298_v4 = vpop.f32.mrf.mxu1  ;;  %v4034_v44 = vld [vmem:[%s4375_s4 + $0x10] sm:$0xff]  }
0x1463   :  { %v4041_v4 = vld [vmem:[%s4375_s4 + $0x8] sm:$0xff]  }
0x1464   :  { %v2954_v38 = vpop.f32.mrf.mxu1 }
0x1465   :  { %v4048_v38 = vld [vmem:[%s4375_s4] sm:$0xff]  }
0x14eb   :  { %v1303_v22 = vpop.xlane.xlu0 %1302 }
0x14ec   :  { %v1304_v6 = vsub.f32 %v1296_v18, %v1303_v22  ;;  %v4020_v18 = vld [vmem:[%s4375_s4 + $0x20] sm:$0xff]  }
0x14ee   :  { %v1305_v24 = vmul.f32 1.442695, %v1304_v6 }
0x14f0   :  { %3247 = vpow2.f32 %v1305_v24 }
0x14fd   :  { %v3248_v25 = vpop.eup %3247 }
0x14fe   :  { %v1307_v46 = vsel %vm348_vm2, %v3248_v25, 0.0 }
0x14ff   :  { %1308 = vadd.xlane.f32.xlu1 %v1307_v46 }
0x1588   :  { %v1309_v27 = vpop.xlane.xlu1 %1308 }
0x1589   :  { %3249 = vrcp.f32 %v1309_v27 }
0x1596   :  { %v3250_v32 = vpop.eup %3249 }
0x1597   :  { %v1311_v33 = vmul.f32 %v3250_v32, %v3248_v25 }
0x1599   :  { %1319 = vperm.xlu1 %3180, %v1311_v33   ;;  %1314 = vperm.xlu0 %3173, %v1311_v33  }
0x159d   :  { %3181 = vset.pattern.permute.xlu1 %v3426_v36  ;;  %3182 = vset.pattern.permute.xlu0 %v3429_v42 }
0x159e   :  { %1325 = vperm.xlu1 %3181, %v1311_v33   ;;  %1331 = vperm.xlu0 %3182, %v1311_v33  }
0x15a2   :  { %3183 = vset.pattern.permute.xlu1 %v3430_v43  ;;  %3185 = vset.pattern.permute.xlu0 %v3432_v47 }
0x15a3   :  { %1337 = vperm.xlu1 %3183, %v1311_v33   ;;  %1349 = vperm.xlu0 %3185, %v1311_v33  }
0x15a7   :  { %3184 = vset.pattern.permute.xlu1 %v3431_v45  ;;  %3186 = vset.pattern.permute.xlu0 %v3427_v37 }
0x15a8   :  { %1343 = vperm.xlu1 %3184, %v1311_v33  }
0x15ac   :  { %3187 = vset.pattern.permute.xlu1 %v3428_v41 }
0x1614   :  { %v1320_v9 = vpop.permute.xlu1 %1319  ;;  %v1315_v15 = vpop.permute.xlu0 %1314 }
0x1615   :  { %v1322_v12 = vmul.f32 %v1320_v9, %v3667_v50  ;;  %v1317_v34 = vmul.f32 %v1315_v15, %v3672_v51 }
0x1617   :  { %v1323_v1 = vadd.f32 %v1322_v12, %v1317_v34 }
0x1619   :  { %v1326_v35 = vpop.permute.xlu1 %1325  ;;  %v1332_v3 = vpop.permute.xlu0 %1331 }
0x161a   :  { %v1328_v2 = vmul.f32 %v1326_v35, %v3679_v55  ;;  %v1334_v8 = vmul.f32 %v1332_v3, %v3684_v58 }
0x161c   :  { %v1329_v5 = vadd.f32 %v1328_v2, %v1323_v1 }
0x161e   :  { %v1338_v40 = vpop.permute.xlu1 %1337  ;;  %v1335_v11 = vadd.f32 %v1334_v8, %v1329_v5  ;;  %v1350_v13 = vpop.permute.xlu0 %1349 }
0x161f   :  { %v1340_v48 = vmul.f32 %v1338_v40, %v3690_v61  ;;  %v1352_v50 = vmul.f32 %v1350_v13, %v3703_v19  ;;  %v4092_v13 = vld [vmem:[%s4376_s5] sm:$0xff]  }
0x1621   :  { %v1341_v29 = vadd.f32 %v1340_v48, %v1335_v11  ;;  %v4075_v11 = vld [vmem:[%s4377_s6] sm:$0xff]   ;;  %v4083_v48 = vld [vmem:[%s4376_s5 + $0x8] sm:$0xff]  }
0x1623   :  { %v1344_v49 = vpop.permute.xlu1 %1343 }
0x1624   :  { %v1346_v52 = vmul.f32 %v1344_v49, %v3696_v7 }
0x1626   :  { %v1347_v51 = vadd.f32 %v1346_v52, %v1341_v29 }
0x1628   :  { %v1353_v30 = vadd.f32 %v1352_v50, %v1347_v51 }
0x162a   :  { %v1354_v56 = vpack.c.bf16 %v1353_v30, %v1353_v30 }
0x162c   :  { %2960 = vmatmul.mubr.msk.bf16.vlgmr.msra.gmra.mxu1 %vm249_vm1, %v1354_v56 }
0x162d   :  { %2964 = vmatpush3.bf16.msra.mxu1 %v3709_v26  ;;  %2967 = vmatprep.mubr.msk.bf16.mxu1 %vm3425_vm0, %v3424_v0 }
0x162e   :  { %2965 = vmatprep.subr.bf16.mxu1 %v3424_v0 }
0x1631   :  { %2966 = vmatpush3.bf16.msra.mxu1 %v3716_v28 }
0x1632   :  { %2979 = vmatprep.subr.bf16.mxu1 %v3424_v0 }
0x1634   :  { %2968 = vmatmul.mubr.msk.bf16.vlgmr.msra.gmra.mxu1 %vm249_vm1, %v3950_v14 }
0x1635   :  { %2980 = vmatpush3.bf16.msra.mxu1 %v3743_v21  ;;  %2983 = vmatprep.mubr.msk.bf16.mxu1 %vm3425_vm0, %v3424_v0 }
0x1636   :  { %2981 = vmatprep.subr.bf16.mxu1 %v3424_v0 }
0x1639   :  { %2982 = vmatpush3.bf16.msra.mxu1 %v3753_v31  ;;  %v4006_v31 = vld [vmem:[%s4375_s4 + $0x30] sm:$0xff]  }
0x163a   :  { %2995 = vmatprep.subr.bf16.mxu1 %v3424_v0 }
0x16ec   :  { %v1392_v55 = vpop.f32.mrf.mxu1 }
0x16ee   :  { %v2961_v58 = vpop.f32.mrf.mxu1 }
0x16f0   :  { %v1395_v61 = vpop.f32.mrf.mxu1 }
0x16f2   :  { %v2962_v7 = vpop.f32.mrf.mxu1 }
0x16f4   :  { %v1432_v19 = vpop.f32.mrf.mxu1 }
0x16f5   :  { %v1433_v26 = vadd.f32 %v1432_v19, %v1392_v55 }
0x16f6   :  { %v2969_v28 = vpop.f32.mrf.mxu1 }
0x16f7   :  { %v1438_v60 = vmax.f32 %v1433_v26, 0.0 }
0x16f8   :  { %v1435_v14 = vpop.f32.mrf.mxu1 }
0x16f9   :  { %v1439_v63 = vpack.c.bf16 %v1438_v60, %v1438_v60 }
0x16fa   :  { %v2970_v21 = vpop.f32.mrf.mxu1 }
0x16fb   :  { %2984 = vmatmul.mubr.msk.bf16.vlgmr.msra.gmra.mxu1 %vm249_vm1, %v1439_v63 }
0x16fc   :  { %2996 = vmatpush3.bf16.msra.mxu1 %v3997_v17  ;;  %3011 = vmatprep.mubr.msk.bf16.mxu1 %vm3425_vm0, %v3424_v0 }
0x16fd   :  { %2997 = vmatprep.subr.bf16.mxu1 %v3424_v0 }
0x1700   :  { %2998 = vmatpush3.bf16.msra.mxu1 %v4006_v31 }
0x1701   :  { %2999 = vmatprep.subr.bf16.mxu1 %v3424_v0 }
0x1704   :  { %3000 = vmatpush3.bf16.msra.mxu1 %v4013_v16 }
0x1705   :  { %3001 = vmatprep.subr.bf16.mxu1 %v3424_v0 }
0x1708   :  { %3002 = vmatpush3.bf16.msra.mxu1 %v4020_v18 }
0x1709   :  { %3003 = vmatprep.subr.bf16.mxu1 %v3424_v0 }
0x170c   :  { %3004 = vmatpush3.bf16.msra.mxu1 %v4027_v53 }
0x170d   :  { %3005 = vmatprep.subr.bf16.mxu1 %v3424_v0 }
0x1710   :  { %3006 = vmatpush3.bf16.msra.mxu1 %v4034_v44 }
0x1711   :  { %3007 = vmatprep.subr.bf16.mxu1 %v3424_v0 }
0x1714   :  { %3008 = vmatpush3.bf16.msra.mxu1 %v4041_v4 }
0x1715   :  { %3009 = vmatprep.subr.bf16.mxu1 %v3424_v0 }
0x1718   :  { %3010 = vmatpush3.bf16.msra.mxu1 %v4048_v38 }
0x1719   :  { %3047 = vmatprep.subr.bf16.mxu1 %v3424_v0 }
0x17bb   :  { %v1517_v22 = vpop.f32.mrf.mxu1 }
0x17bc   :  { %v1518_v6 = vadd.f32 %v1517_v22, %v3958_v20 }
0x17bd   :  { %v2985_v24 = vpop.f32.mrf.mxu1 }
0x17be   :  { %v1523_v25 = vadd.f32 %v3781_v59, %v1518_v6 }
0x17bf   :  { %v1520_v46 = vpop.f32.mrf.mxu1 }
0x17c0   :  { %3251 = vtanh.f32 %v1523_v25  ;;  %v2593_v33 = vmul.f32 -1.442695, %v1523_v25 }
0x17c1   :  { %v2986_v27 = vpop.f32.mrf.mxu1 }
0x17c2   :  { %3253 = vpow2.f32 %v2593_v33  ;;  %v4105_v27 = vld [vmem:[%s4381_s10 + $0x8] sm:$0xff]  }
0x17cd   :  { %v3252_v32 = vpop.eup %3251 }
0x17ce   :  { %1533 = vrot.lane.b32.xlu1 %v3252_v32, %s3433_s23  ;;  %v4114_v32 = vld [vmem:[%s4381_s10] sm:$0xff]  }
0x17cf   :  { %v3254_v9 = vpop.eup %3253 }
0x17d0   :  { %v1527_v15 = vadd.f32 1.0, %v3254_v9 }
0x17d2   :  { %3255 = vrcp.f32 %v1527_v15 }
0x17df   :  { %v3256_v12 = vpop.eup %3255 }
0x17e0   :  { %v1531_v20 = vmul.f32 %v3256_v12, %v3912_v62  ;;  %v4066_v62 = vld [vmem:[%s4377_s6 + $0x8] sm:$0xff]  }
0x1840   :  { %v1534_v34 = vpop.permute.xlu1 %1533 }
0x1841   :  { %v1536_v35 = vmul.f32 %v3256_v12, %v1534_v34 }
0x1843   :  { %1538 = vrot.lane.b32.xlu1 %v1536_v35, %s3434_s24  ;;  %v4143_v35 = vld [vmem:[%s4379_s8] sm:$0xff]  }
0x18b5   :  { %v1539_v1 = vpop.permute.xlu1 %1538 }
0x18b6   :  { %v4057_v59 = vadd.f32 %v1539_v1, %v1531_v20 }
0x18b8   :  { %3257 = vtanh.f32 %v4057_v59 }
0x18c5   :  { %v3258_v2 = vpop.eup %3257 }
0x18c6   :  { %1544 = vrot.lane.b32.xlu0 %v3258_v2, %s3433_s23 }
0x1938   :  { %v1545_v3 = vpop.permute.xlu0 %1544 }
0x1939   :  { %v1547_v5 = vmul.f32 %v3256_v12, %v1545_v3 }
0x193b   :  { %v1548_v8 = vpack.c.bf16 %v1547_v5, %v1547_v5 }
0x193d   :  { %1550 = vrot.lane.b32.xlu1 %v1548_v8, %s3434_s24 }
0x19af   :  { %v1551_v40 = vpop.permute.xlu1 %1550 }
0x19b0   :  { %2992 = vmatmul.mubr.msk.bf16.vlgmr.msra.gmra.mxu0 %vm249_vm1, %v1551_v40 }
0x19b1   :  { %3016 = vmatpush3.bf16.msra.mxu0 %v4066_v62  ;;  %3019 = vmatprep.mubr.msk.bf16.mxu0 %vm3425_vm0, %v3424_v0 }
0x19b2   :  { %3017 = vmatprep.subr.bf16.mxu0 %v3424_v0 }
0x19b5   :  { %3018 = vmatpush3.bf16.msra.mxu0 %v4075_v11 }
0x19b6   :  { %3023 = vmatprep.subr.bf16.mxu0 %v3424_v0 }
0x19b8   :  { %3020 = vmatmul.mubr.msk.bf16.vlgmr.msra.gmra.mxu0 %vm249_vm1, %v1551_v40 }
0x19b9   :  { %3024 = vmatpush3.bf16.msra.mxu0 %v4083_v48  ;;  %3027 = vmatprep.mubr.msk.bf16.mxu0 %vm3425_vm0, %v3424_v0 }
0x19ba   :  { %3025 = vmatprep.subr.bf16.mxu0 %v3424_v0 }
0x19bd   :  { %3026 = vmatpush3.bf16.msra.mxu0 %v4092_v13 }
0x19be   :  { %3031 = vmatprep.subr.bf16.mxu0 %v3424_v0 }
0x1a70   :  { %v1589_v49 = vpop.f32.mrf.mxu0 }
0x1a71   :  { %v1590_v29 = vadd.f32 %v3823_v54, %v1589_v49 }
0x1a72   :  { %v2993_v52 = vpop.f32.mrf.mxu0 }
0x1a73   :  { %1596 = vst [vmem:[#allocation7 + $0x8] sm:$0xf] %v1590_v29  ;;  %v1597_v50 = vsel %vm708_vm3, %v1590_v29, -inf }
0x1a74   :  { %1598 = vmax.xlane.f32.xlu0 %v1597_v50  ;;  %v1592_v51 = vpop.f32.mrf.mxu0 }
0x1a76   :  { %v2994_v30 = vpop.f32.mrf.mxu0 }
0x1a78   :  { %v1696_v56 = vpop.f32.mrf.mxu0 }
0x1a7a   :  { %v3021_v55 = vpop.f32.mrf.mxu0 }
0x1a7c   :  { %v1699_v58 = vpop.f32.mrf.mxu0 }
0x1a7e   :  { %v3022_v61 = vpop.f32.mrf.mxu0 }
0x1afd   :  { %v1599_v7 = vpop.xlane.xlu0 %1598 }
0x1afe   :  { %vm1600_vm12 = vcmp.eq.f32.partialorder %v1590_v29, %v1599_v7 }
0x1aff   :  { %v1601_v19 = vsel %vm1600_vm12, %v3827_v23, 128 }
0x1b00   :  { %v1602_v26 = vsel %vm708_vm3, %v1601_v19, 2147483647 }
0x1b01   :  { %v1604_v28 = vshra.s32 %v1602_v26, 16  ;;  %v1603_v54 = vand.u32 65535, %v1602_v26 }
0x1b03   :  { %v1606_v60 = vcvt.s32.f32 %v1604_v28  ;;  %v1605_v63 = vcvt.s32.f32 %v1603_v54  ;;  %v4165_v54 = vld [vmem:[%s4374_s3] sm:$0xf] }
0x1b05   :  { %1607 = vmin.xlane.f32.xlu1 %v1606_v60 }
0x1b8e   :  { %v1608_v14 = vpop.xlane.xlu1 %1607 }
0x1b8f   :  { %vm1609_vm13 = vcmp.eq.f32.partialorder %v1606_v60, %v1608_v14  ;;  %v1614_v22 = vcvt.f32.s32 %v1608_v14 }
0x1b90   :  { %v1610_v21 = vsel %vm1609_vm13, %v1605_v63, inf }
0x1b91   :  { %1611 = vmin.xlane.f32.xlu0 %v1610_v21  ;;  %v1615_v24 = vshll.u32 %v1614_v22, 16 }
0x1c1a   :  { %v1612_v6 = vpop.xlane.xlu0 %1611 }
0x1c1b   :  { %v1613_v25 = vcvt.f32.s32 %v1612_v6  ;;  %v4177_v6 = vld [vmem:[%s4374_s3 + $0xc] sm:$0xf] }
0x1c1d   :  { %v1616_v46 = vadd.s32 %v1615_v24, %v1613_v25 }
0x1c1f   :  { %vm1617_vm14 = vcmp.eq.s32.totalorder %v3827_v23, %v1616_v46  ;;  %v4183_v46 = vld [vmem:[%s4374_s3 + $0x10] sm:$0xf] }
0x1c20   :  { %vm2596_vm15 = vmpackc.low %vm1617_vm14, %vm1617_vm14 }
0x1c21   :  { %3012 = vmatmul.mubr.msk.bf16.vlgmr.msra.gmra.mxu1 %vm2596_vm15, %v3435_v57 }
0x1c22   :  { %3048 = vmatpush3.bf16.msra.mxu1 %v4105_v27  ;;  %3051 = vmatprep.mubr.msk.bf16.mxu1 %vm3425_vm0, %v3424_v0 }
0x1c23   :  { %3049 = vmatprep.subr.bf16.mxu1 %v3424_v0 }
0x1c26   :  { %3050 = vmatpush3.bf16.msra.mxu1 %v4114_v32 }
0x1c27   :  { %3063 = vmatprep.subr.bf16.mxu1 %v3424_v0 }
0x1c29   :  { %3052 = vmatmul.mubr.msk.bf16.vlgmr.msra.gmra.mxu1 %vm249_vm1, %v1551_v40 }
0x1c2a   :  { %3064 = vmatpush3.bf16.msra.mxu1 %v3793_v10  ;;  %3067 = vmatprep.mubr.msk.bf16.mxu1 %vm3425_vm0, %v3424_v0  ;;  %v4132_v10 = vld [vmem:[%s4379_s8 + $0x8] sm:$0xff]  }
0x1c2b   :  { %3065 = vmatprep.subr.bf16.mxu1 %v3424_v0 }
0x1c2e   :  { %3066 = vmatpush3.bf16.msra.mxu1 %v3799_v39 }
0x1c2f   :  { %3091 = vmatprep.subr.bf16.mxu1 %v3424_v0 }
0x1ce1   :  { %v1655_v33 = vpop.f32.mrf.mxu1 }
0x1ce2   :  { %v4125_v9 = vpack.c.bf16 %v1655_v33, %v1655_v33 }
0x1ce3   :  { %v3013_v15 = vpop.f32.mrf.mxu1 }
0x1ce4   :  { %3028 = vmatmul.mubr.msk.bf16.vlgmr.msra.gmra.mxu0 %vm249_vm1, %v4125_v9 }
0x1ce5   :  { %v1658_v12 = vpop.f32.mrf.mxu1  ;;  %3032 = vmatpush3.bf16.msra.mxu0 %v4132_v10  ;;  %3035 = vmatprep.mubr.msk.bf16.mxu0 %vm3425_vm0, %v3424_v0 }
0x1ce6   :  { %3033 = vmatprep.subr.bf16.mxu0 %v3424_v0 }
0x1ce7   :  { %v3014_v39 = vpop.f32.mrf.mxu1 }
0x1ce8   :  { %v4189_v39 = vld [vmem:[%s4374_s3 + $0x14] sm:$0xf] }
0x1ce9   :  { %v4138_v34 = vpop.f32.mrf.mxu1  ;;  %3034 = vmatpush3.bf16.msra.mxu0 %v4143_v35 }
0x1cea   :  { %3039 = vmatprep.subr.bf16.mxu0 %v3424_v0 }
0x1ceb   :  { %v3053_v20 = vpop.f32.mrf.mxu1 }
0x1ced   :  { %v1921_v1 = vpop.f32.mrf.mxu1 }
0x1cef   :  { %v3054_v2 = vpop.f32.mrf.mxu1 }
0x1da4   :  { %v1739_v3 = vpop.f32.mrf.mxu0 }
0x1da5   :  { %v1740_v5 = vadd.f32 %v1739_v3, %v1696_v56 }
0x1da6   :  { %v3029_v8 = vpop.f32.mrf.mxu0 }
0x1da7   :  { %v1745_v40 = vsel %vm348_vm2, %v1740_v5, -inf }
0x1da8   :  { %1746 = vmax.xlane.f32.xlu0 %v1745_v40  ;;  %v1742_v49 = vpop.f32.mrf.mxu0 }
0x1daa   :  { %v3030_v29 = vpop.f32.mrf.mxu0 }
0x1dab   :  { %v4202_v29 = vld [vmem:[%s4378_s7 + $0x8] sm:$0xff]  }
0x1e31   :  { %v1747_v52 = vpop.xlane.xlu0 %1746 }
0x1e32   :  { %v1748_v50 = vsub.f32 %v1740_v5, %v1747_v52  ;;  %v4195_v5 = vld [vmem:[%s4374_s3 + $0x18] sm:$0xf]  ;;  %v4211_v52 = vld [vmem:[%s4378_s7] sm:$0xff]  }
0x1e34   :  { %v1749_v51 = vmul.f32 1.442695, %v1748_v50  ;;  %v4220_v50 = vld [vmem:[%s4380_s9 + $0x8] sm:$0xff]  }
0x1e36   :  { %3259 = vpow2.f32 %v1749_v51  ;;  %v4229_v51 = vld [vmem:[%s4380_s9] sm:$0xff]  }
0x1e43   :  { %v3260_v30 = vpop.eup %3259 }
0x1e44   :  { %v1751_v55 = vsel %vm348_vm2, %v3260_v30, 0.0 }
0x1e45   :  { %1752 = vadd.xlane.f32.xlu1 %v1751_v55 }
0x1ece   :  { %v1753_v58 = vpop.xlane.xlu1 %1752 }
0x1ecf   :  { %3261 = vrcp.f32 %v1753_v58 }
0x1edc   :  { %v3262_v61 = vpop.eup %3261 }
0x1edd   :  { %v1755_v7 = vmul.f32 %v3262_v61, %v3260_v30 }
0x1edf   :  { %1763 = vperm.xlu1 %3187, %v1755_v7   ;;  %1758 = vperm.xlu0 %3186, %v1755_v7  }
0x1ee3   :  { %3188 = vset.pattern.permute.xlu1 %v3426_v36  ;;  %3194 = vset.pattern.permute.xlu0 %v3428_v41  ;;  %v4159_v41 = vld [vmem:[%s4374_s3 + $0x4] sm:$0xf] }
0x1ee4   :  { %1769 = vperm.xlu1 %3188, %v1755_v7  }
0x1ee8   :  { %3189 = vset.pattern.permute.xlu1 %v3429_v42 }
0x1ee9   :  { %1775 = vperm.xlu1 %3189, %v1755_v7  }
0x1eed   :  { %3190 = vset.pattern.permute.xlu1 %v3430_v43 }
0x1eee   :  { %1781 = vperm.xlu1 %3190, %v1755_v7  }
0x1ef2   :  { %3191 = vset.pattern.permute.xlu1 %v3431_v45 }
0x1ef3   :  { %1787 = vperm.xlu1 %3191, %v1755_v7  }
0x1ef7   :  { %3192 = vset.pattern.permute.xlu1 %v3432_v47 }
0x1ef8   :  { %1793 = vperm.xlu1 %3192, %v1755_v7  }
0x1efc   :  { %3193 = vset.pattern.permute.xlu1 %v3427_v37  ;;  %v4171_v37 = vld [vmem:[%s4374_s3 + $0x8] sm:$0xf] }
0x1f5a   :  { %v1764_v56 = vpop.permute.xlu1 %1763  ;;  %v1759_v28 = vpop.permute.xlu0 %1758 }
0x1f5b   :  { %v1766_v60 = vmul.f32 %v4159_v41, %v1764_v56  ;;  %v1761_v14 = vmul.f32 %v4165_v54, %v1759_v28 }
0x1f5d   :  { %v1767_v22 = vadd.f32 %v1766_v60, %v1761_v14 }
0x1f5f   :  { %v1770_v19 = vpop.permute.xlu1 %1769 }
0x1f60   :  { %v1772_v21 = vmul.f32 %v4171_v37, %v1770_v19 }
0x1f62   :  { %v1773_v25 = vadd.f32 %v1772_v21, %v1767_v22 }
0x1f64   :  { %v1776_v26 = vpop.permute.xlu1 %1775 }
0x1f65   :  { %v1778_v24 = vmul.f32 %v4177_v6, %v1776_v26 }
0x1f67   :  { %v1779_v12 = vadd.f32 %v1778_v24, %v1773_v25 }
0x1f69   :  { %v1782_v63 = vpop.permute.xlu1 %1781 }
0x1f6a   :  { %v1784_v33 = vmul.f32 %v4183_v46, %v1782_v63 }
0x1f6c   :  { %v1785_v1 = vadd.f32 %v1784_v33, %v1779_v12 }
0x1f6e   :  { %v1788_v15 = vpop.permute.xlu1 %1787 }
0x1f6f   :  { %v1790_v20 = vmul.f32 %v4189_v39, %v1788_v15 }
0x1f71   :  { %v1791_v3 = vadd.f32 %v1790_v20, %v1785_v1 }
0x1f73   :  { %v1794_v2 = vpop.permute.xlu1 %1793 }
0x1f74   :  { %v1796_v8 = vmul.f32 %v4195_v5, %v1794_v2 }
0x1f76   :  { %v1797_v40 = vadd.f32 %v1796_v8, %v1791_v3 }
0x1f78   :  { %v1798_v49 = vpack.c.bf16 %v1797_v40, %v1797_v40 }
0x1f7a   :  { %3036 = vmatmul.mubr.msk.bf16.vlgmr.msra.gmra.mxu0 %vm249_vm1, %v1798_v49 }
0x1f7b   :  { %3040 = vmatpush3.bf16.msra.mxu0 %v4202_v29  ;;  %3043 = vmatprep.mubr.msk.bf16.mxu0 %vm3425_vm0, %v3424_v0 }
0x1f7c   :  { %3041 = vmatprep.subr.bf16.mxu0 %v3424_v0 }
0x1f7f   :  { %3042 = vmatpush3.bf16.msra.mxu0 %v4211_v52 }
0x1f80   :  { %3055 = vmatprep.subr.bf16.mxu0 %v3424_v0 }
0x1f82   :  { %3044 = vmatmul.mubr.msk.bf16.vlgmr.msra.gmra.mxu0 %vm249_vm1, %v4125_v9 }
0x1f83   :  { %3056 = vmatpush3.bf16.msra.mxu0 %v4220_v50  ;;  %3059 = vmatprep.mubr.msk.bf16.mxu0 %vm3425_vm0, %v3424_v0 }
0x1f84   :  { %3057 = vmatprep.subr.bf16.mxu0 %v3424_v0 }
0x1f87   :  { %3058 = vmatpush3.bf16.msra.mxu0 %v4229_v51 }
0x1f88   :  { %3071 = vmatprep.subr.bf16.mxu0 %v3424_v0 }
0x203a   :  { %v1836_v9 = vpop.f32.mrf.mxu0 }
0x203c   :  { %v3037_v30 = vpop.f32.mrf.mxu0 }
0x203e   :  { %v1839_v55 = vpop.f32.mrf.mxu0 }
0x2040   :  { %v3038_v58 = vpop.f32.mrf.mxu0 }
0x2042   :  { %v1876_v61 = vpop.f32.mrf.mxu0 }
0x2043   :  { %v1877_v7 = vadd.f32 %v1876_v61, %v1836_v9 }
0x2044   :  { %v3045_v56 = vpop.f32.mrf.mxu0 }
0x2045   :  { %v1882_v19 = vmax.f32 %v1877_v7, 0.0 }
0x2046   :  { %v1879_v26 = vpop.f32.mrf.mxu0 }
0x2047   :  { %v1883_v28 = vpack.c.bf16 %v1882_v19, %v1882_v19 }
0x2048   :  { %v3046_v60 = vpop.f32.mrf.mxu0 }
0x2049   :  { %3060 = vmatmul.mubr.msk.bf16.vlgmr.msra.gmra.mxu0 %vm249_vm1, %v1883_v28 }
0x204a   :  { %3072 = vmatpush3.bf16.msra.mxu0 %v3997_v17  ;;  %3087 = vmatprep.mubr.msk.bf16.mxu0 %vm3425_vm0, %v3424_v0 }
0x204b   :  { %3073 = vmatprep.subr.bf16.mxu0 %v3424_v0 }
0x204e   :  { %3074 = vmatpush3.bf16.msra.mxu0 %v4006_v31 }
0x204f   :  { %3075 = vmatprep.subr.bf16.mxu0 %v3424_v0 }
0x2052   :  { %3076 = vmatpush3.bf16.msra.mxu0 %v4013_v16 }
0x2053   :  { %3077 = vmatprep.subr.bf16.mxu0 %v3424_v0 }
0x2056   :  { %3078 = vmatpush3.bf16.msra.mxu0 %v4020_v18  ;;  %v4256_v18 = vld [vmem:[%s4382_s11] ss:$0 sm:$0xff] }
0x2057   :  { %3079 = vmatprep.subr.bf16.mxu0 %v3424_v0 }
0x205a   :  { %3080 = vmatpush3.bf16.msra.mxu0 %v4027_v53 }
0x205b   :  { %3081 = vmatprep.subr.bf16.mxu0 %v3424_v0 }
0x205e   :  { %3082 = vmatpush3.bf16.msra.mxu0 %v4034_v44 }
0x205f   :  { %3083 = vmatprep.subr.bf16.mxu0 %v3424_v0 }
0x2062   :  { %3084 = vmatpush3.bf16.msra.mxu0 %v4041_v4 }
0x2063   :  { %3085 = vmatprep.subr.bf16.mxu0 %v3424_v0 }
0x2066   :  { %3086 = vmatpush3.bf16.msra.mxu0 %v4048_v38 }
0x2067   :  { %3123 = vmatprep.subr.bf16.mxu0 %v3424_v0 }
0x2109   :  { %v1961_v17 = vpop.f32.mrf.mxu0 }
0x210a   :  { %v1962_v31 = vadd.f32 %v1961_v17, %v4138_v34 }
0x210b   :  { %v3061_v16 = vpop.f32.mrf.mxu0 }
0x210c   :  { %v1967_v53 = vadd.f32 %v4256_v18, %v1962_v31 }
0x210d   :  { %v1964_v44 = vpop.f32.mrf.mxu0 }
0x210e   :  { %3263 = vtanh.f32 %v1967_v53  ;;  %v2604_v38 = vmul.f32 -1.442695, %v1967_v53 }
0x210f   :  { %v3062_v4 = vpop.f32.mrf.mxu0 }
0x2110   :  { %3265 = vpow2.f32 %v2604_v38 }
0x211b   :  { %v3264_v14 = vpop.eup %3263 }
0x211c   :  { %1977 = vrot.lane.b32.xlu1 %v3264_v14, %s3433_s23 }
0x211d   :  { %v3266_v63 = vpop.eup %3265 }
0x211e   :  { %v1971_v21 = vadd.f32 1.0, %v3266_v63 }
0x2120   :  { %3267 = vrcp.f32 %v1971_v21 }
0x212d   :  { %v3268_v34 = vpop.eup %3267 }
0x212e   :  { %v1975_v25 = vmul.f32 %v3268_v34, %v4057_v59 }
0x218e   :  { %v1978_v22 = vpop.permute.xlu1 %1977 }
0x218f   :  { %v1980_v24 = vmul.f32 %v3268_v34, %v1978_v22 }
0x2191   :  { %1982 = vrot.lane.b32.xlu0 %v1980_v24, %s3434_s24 }
0x2203   :  { %v1983_v33 = vpop.permute.xlu0 %1982 }
0x2204   :  { %v4262_v15 = vadd.f32 %v1983_v33, %v1975_v25 }
0x2206   :  { %3269 = vtanh.f32 %v4262_v15 }
0x2213   :  { %v3270_v12 = vpop.eup %3269 }
0x2214   :  { %1988 = vrot.lane.b32.xlu1 %v3270_v12, %s3433_s23 }
0x2286   :  { %v1989_v20 = vpop.permute.xlu1 %1988 }
0x2287   :  { %v1991_v1 = vmul.f32 %v3268_v34, %v1989_v20 }
0x2289   :  { %v1992_v2 = vpack.c.bf16 %v1991_v1, %v1991_v1 }
0x228b   :  { %1994 = vrot.lane.b32.xlu0 %v1992_v2, %s3434_s24 }
0x22fd   :  { %v1995_v3 = vpop.permute.xlu0 %1994 }
0x22fe   :  { %3068 = vmatmul.mubr.msk.bf16.vlgmr.msra.gmra.mxu1 %vm249_vm1, %v1995_v3 }
0x22ff   :  { %3092 = vmatpush3.bf16.msra.mxu1 %v4066_v62  ;;  %3095 = vmatprep.mubr.msk.bf16.mxu1 %vm3425_vm0, %v3424_v0  ;;  %v4284_v62 = vld [vmem:[%s4384_s13] ss:$0 sm:$0xff] }
0x2300   :  { %3093 = vmatprep.subr.bf16.mxu1 %v3424_v0 }
0x2303   :  { %3094 = vmatpush3.bf16.msra.mxu1 %v4075_v11 }
0x2304   :  { %3099 = vmatprep.subr.bf16.mxu1 %v3424_v0 }
0x2306   :  { %3096 = vmatmul.mubr.msk.bf16.vlgmr.msra.gmra.mxu1 %vm249_vm1, %v1995_v3 }
0x2307   :  { %3100 = vmatpush3.bf16.msra.mxu1 %v4083_v48  ;;  %3103 = vmatprep.mubr.msk.bf16.mxu1 %vm3425_vm0, %v3424_v0 }
0x2308   :  { %3101 = vmatprep.subr.bf16.mxu1 %v3424_v0 }
0x230b   :  { %3102 = vmatpush3.bf16.msra.mxu1 %v4092_v13 }
0x230c   :  { %3107 = vmatprep.subr.bf16.mxu1 %v3424_v0 }
0x23be   :  { %v2033_v59 = vpop.f32.mrf.mxu1 }
0x23bf   :  { %v2034_v11 = vadd.f32 %v4284_v62, %v2033_v59 }
0x23c0   :  { %v3069_v8 = vpop.f32.mrf.mxu1 }
0x23c1   :  { %2040 = vst [vmem:[#allocation7 + $0xc] sm:$0xf] %v2034_v11  ;;  %v2041_v48 = vsel %vm708_vm3, %v2034_v11, -inf }
0x23c2   :  { %2042 = vmax.xlane.f32.xlu1 %v2041_v48  ;;  %v2036_v40 = vpop.f32.mrf.mxu1 }
0x23c4   :  { %v3070_v49 = vpop.f32.mrf.mxu1 }
0x23c6   :  { %v2140_v9 = vpop.f32.mrf.mxu1 }
0x23c8   :  { %v3097_v30 = vpop.f32.mrf.mxu1 }
0x23ca   :  { %v2143_v13 = vpop.f32.mrf.mxu1 }
0x23cc   :  { %v3098_v55 = vpop.f32.mrf.mxu1 }
0x244b   :  { %v2043_v58 = vpop.xlane.xlu1 %2042 }
0x244c   :  { %vm2044_vm4 = vcmp.eq.f32.partialorder %v2034_v11, %v2043_v58 }
0x244d   :  { %v2045_v61 = vsel %vm2044_vm4, %v3827_v23, 128 }
0x244e   :  { %v2046_v7 = vsel %vm708_vm3, %v2045_v61, 2147483647 }
0x244f   :  { %v2048_v56 = vshra.s32 %v2046_v7, 16  ;;  %v2047_v26 = vand.u32 65535, %v2046_v7 }
0x2451   :  { %v2050_v19 = vcvt.s32.f32 %v2048_v56  ;;  %v2049_v60 = vcvt.s32.f32 %v2047_v26 }
0x2453   :  { %2051 = vmin.xlane.f32.xlu0 %v2050_v19 }
0x24dc   :  { %v2052_v28 = vpop.xlane.xlu0 %2051 }
0x24dd   :  { %vm2053_vm5 = vcmp.eq.f32.partialorder %v2050_v19, %v2052_v28  ;;  %v2058_v31 = vcvt.f32.s32 %v2052_v28 }
0x24de   :  { %v2054_v17 = vsel %vm2053_vm5, %v2049_v60, inf }
0x24df   :  { %2055 = vmin.xlane.f32.xlu0 %v2054_v17  ;;  %v2059_v53 = vshll.u32 %v2058_v31, 16 }
0x2568   :  { %v2056_v16 = vpop.xlane.xlu0 %2055 }
0x2569   :  { %v2057_v44 = vcvt.f32.s32 %v2056_v16 }
0x256b   :  { %v2060_v4 = vadd.s32 %v2059_v53, %v2057_v44 }
0x256d   :  { %vm2061_vm6 = vcmp.eq.s32.totalorder %v3827_v23, %v2060_v4  ;;  %v3312_v23 = vld [vmem:[%s4383_s12 + $0x8] sm:$0xff]  }
0x256e   :  { %vm2607_vm7 = vmpackc.low %vm2061_vm6, %vm2061_vm6 }
0x256f   :  { %3088 = vmatmul.mubr.msk.bf16.vlgmr.msra.gmra.mxu0 %vm2607_vm7, %v3435_v57  ;;  %v3313_v57 = vld [vmem:[%s4383_s12] sm:$0xff]   ;;  %s3436_s12 = smov 96  }
0x2570   :  { %3124 = vmatpush3.bf16.msra.mxu0 %v4105_v27  ;;  %3127 = vmatprep.mubr.msk.bf16.mxu0 %vm3425_vm0, %v3424_v0 }
0x2571   :  { %3125 = vmatprep.subr.bf16.mxu0 %v3424_v0 }
0x2574   :  { %3126 = vmatpush3.bf16.msra.mxu0 %v4114_v32 }
0x2575   :  { %3139 = vmatprep.subr.bf16.mxu0 %v3424_v0 }
0x2577   :  { %3128 = vmatmul.mubr.msk.bf16.vlgmr.msra.gmra.mxu0 %vm249_vm1, %v1995_v3 }
0x2578   :  { %3140 = vmatpush3.bf16.msra.mxu0 %v3312_v23  ;;  %3143 = vmatprep.mubr.msk.bf16.mxu0 %vm3425_vm0, %v3424_v0 }
0x2579   :  { %3141 = vmatprep.subr.bf16.mxu0 %v3424_v0 }
0x257c   :  { %3142 = vmatpush3.bf16.msra.mxu0 %v3313_v57 }
0x262f   :  { %v2099_v27 = vpop.f32.mrf.mxu0 }
0x2630   :  { %v4308_v32 = vpack.c.bf16 %v2099_v27, %v2099_v27 }
0x2631   :  { %v3089_v14 = vpop.f32.mrf.mxu0 }
0x2632   :  { %3104 = vmatmul.mubr.msk.bf16.vlgmr.msra.gmra.mxu1 %vm249_vm1, %v4308_v32 }
0x2633   :  { %v2102_v38 = vpop.f32.mrf.mxu0  ;;  %3108 = vmatpush3.bf16.msra.mxu1 %v4132_v10  ;;  %3111 = vmatprep.mubr.msk.bf16.mxu1 %vm3425_vm0, %v3424_v0 }
0x2634   :  { %3109 = vmatprep.subr.bf16.mxu1 %v3424_v0 }
0x2635   :  { %v3090_v63 = vpop.f32.mrf.mxu0 }
0x2637   :  { %v4316_v21 = vpop.f32.mrf.mxu0  ;;  %3110 = vmatpush3.bf16.msra.mxu1 %v4143_v35 }
0x2638   :  { %3115 = vmatprep.subr.bf16.mxu1 %v3424_v0 }
0x2639   :  { %v3129_v34 = vpop.f32.mrf.mxu0 }
0x263b   :  { %v2365_v22 = vpop.f32.mrf.mxu0 }
0x263d   :  { %v3130_v24 = vpop.f32.mrf.mxu0 }
0x26f2   :  { %v2183_v25 = vpop.f32.mrf.mxu1 }
0x26f3   :  { %v2184_v33 = vadd.f32 %v2183_v25, %v2140_v9 }
0x26f4   :  { %v3105_v12 = vpop.f32.mrf.mxu1 }
0x26f5   :  { %v2189_v10 = vsel %vm348_vm2, %v2184_v33, -inf }
0x26f6   :  { %2190 = vmax.xlane.f32.xlu1 %v2189_v10  ;;  %v2186_v20 = vpop.f32.mrf.mxu1 }
0x26f8   :  { %v3106_v1 = vpop.f32.mrf.mxu1 }
0x277f   :  { %v2191_v2 = vpop.xlane.xlu1 %2190 }
0x2780   :  { %v2192_v3 = vsub.f32 %v2184_v33, %v2191_v2 }
0x2782   :  { %v2193_v59 = vmul.f32 1.442695, %v2192_v3 }
0x2784   :  { %3271 = vpow2.f32 %v2193_v59 }
0x2791   :  { %v3272_v11 = vpop.eup %3271 }
0x2792   :  { %v2195_v35 = vsel %vm348_vm2, %v3272_v11, 0.0 }
0x2793   :  { %2196 = vadd.xlane.f32.xlu0 %v2195_v35 }
0x281c   :  { %v2197_v8 = vpop.xlane.xlu0 %2196 }
0x281d   :  { %3273 = vrcp.f32 %v2197_v8 }
0x282a   :  { %v3274_v48 = vpop.eup %3273 }
0x282b   :  { %v2199_v40 = vmul.f32 %v3274_v48, %v3272_v11 }
0x282d   :  { %2207 = vperm.xlu0 %3194, %v2199_v40   ;;  %2202 = vperm.xlu1 %3193, %v2199_v40  }
0x2831   :  { %3195 = vset.pattern.permute.xlu1 %v3426_v36  ;;  %3200 = vset.pattern.permute.xlu0 %v3432_v47 }
0x2832   :  { %2213 = vperm.xlu1 %3195, %v2199_v40  }
0x2836   :  { %3196 = vset.pattern.permute.xlu1 %v3429_v42 }
0x2837   :  { %2219 = vperm.xlu1 %3196, %v2199_v40  }
0x283b   :  { %3197 = vset.pattern.permute.xlu1 %v3430_v43 }
0x283c   :  { %2225 = vperm.xlu1 %3197, %v2199_v40  }
0x2840   :  { %3198 = vset.pattern.permute.xlu1 %v3431_v45 }
0x2841   :  { %2231 = vperm.xlu1 %3198, %v2199_v40  }
0x2845   :  { %3199 = vset.pattern.permute.xlu1 %v3432_v47 }
0x2846   :  { %2237 = vperm.xlu1 %3199, %v2199_v40  }
0x28a8   :  { %v2203_v49 = vpop.permute.xlu1 %2202  ;;  %v2208_v13 = vpop.permute.xlu0 %2207 }
0x28a9   :  { %v2210_v36 = vmul.f32 %v4159_v41, %v2208_v13  ;;  %v2205_v55 = vmul.f32 %v4165_v54, %v2203_v49 }
0x28ab   :  { %v2211_v61 = vadd.f32 %v2210_v36, %v2205_v55 }
0x28ad   :  { %v2214_v9 = vpop.permute.xlu1 %2213 }
0x28ae   :  { %v2216_v42 = vmul.f32 %v4171_v37, %v2214_v9 }
0x28b0   :  { %v2217_v7 = vadd.f32 %v2216_v42, %v2211_v61 }
0x28b2   :  { %v2220_v30 = vpop.permute.xlu1 %2219 }
0x28b3   :  { %v2222_v43 = vmul.f32 %v4177_v6, %v2220_v30 }
0x28b5   :  { %v2223_v47 = vadd.f32 %v2222_v43, %v2217_v7 }
0x28b7   :  { %v2226_v58 = vpop.permute.xlu1 %2225 }
0x28b8   :  { %v2228_v45 = vmul.f32 %v4183_v46, %v2226_v58 }
0x28ba   :  { %v2229_v26 = vadd.f32 %v2228_v45, %v2223_v47 }
0x28bc   :  { %v2232_v56 = vpop.permute.xlu1 %2231 }
0x28bd   :  { %v2234_v19 = vmul.f32 %v4189_v39, %v2232_v56 }
0x28bf   :  { %v2235_v60 = vadd.f32 %v2234_v19, %v2229_v26 }
0x28c1   :  { %v2238_v28 = vpop.permute.xlu1 %2237 }
0x28c2   :  { %v2240_v41 = vmul.f32 %v4195_v5, %v2238_v28 }
0x28c4   :  { %v2241_v17 = vadd.f32 %v2240_v41, %v2235_v60 }
0x28c6   :  { %v2242_v54 = vpack.c.bf16 %v2241_v17, %v2241_v17 }
0x28c8   :  { %3112 = vmatmul.mubr.msk.bf16.vlgmr.msra.gmra.mxu1 %vm249_vm1, %v2242_v54 }
0x28c9   :  { %3116 = vmatpush3.bf16.msra.mxu1 %v4202_v29  ;;  %3119 = vmatprep.mubr.msk.bf16.mxu1 %vm3425_vm0, %v3424_v0 }
0x28ca   :  { %3117 = vmatprep.subr.bf16.mxu1 %v3424_v0 }
0x28cd   :  { %3118 = vmatpush3.bf16.msra.mxu1 %v4211_v52 }
0x28ce   :  { %3131 = vmatprep.subr.bf16.mxu1 %v3424_v0 }
0x28d0   :  { %3120 = vmatmul.mubr.msk.bf16.vlgmr.msra.gmra.mxu1 %vm249_vm1, %v4308_v32 }
0x28d1   :  { %3132 = vmatpush3.bf16.msra.mxu1 %v4220_v50  ;;  %3135 = vmatprep.mubr.msk.bf16.mxu1 %vm3425_vm0, %v3424_v0  ;;  %vm2489_vm0 = vcmask 257024  }
0x28d2   :  { %3133 = vmatprep.subr.bf16.mxu1 %v3424_v0 }
0x28d5   :  { %3134 = vmatpush3.bf16.msra.mxu1 %v4229_v51 }
0x2988   :  { %v2280_v37 = vpop.f32.mrf.mxu1 }
0x298a   :  { %v3113_v6 = vpop.f32.mrf.mxu1 }
0x298c   :  { %v2283_v46 = vpop.f32.mrf.mxu1 }
0x298e   :  { %v3114_v39 = vpop.f32.mrf.mxu1 }
0x2990   :  { %v2320_v5 = vpop.f32.mrf.mxu1 }
0x2991   :  { %v2321_v29 = vadd.f32 %v2320_v5, %v2280_v37 }
0x2992   :  { %v3121_v52 = vpop.f32.mrf.mxu1 }
0x2993   :  { %v2326_v31 = vmax.f32 %v2321_v29, 0.0 }
0x2994   :  { %v2323_v16 = vpop.f32.mrf.mxu1 }
0x2995   :  { %v2327_v53 = vpack.c.bf16 %v2326_v31, %v2326_v31 }
0x2996   :  { %v3122_v44 = vpop.f32.mrf.mxu1 }
0x2997   :  { %3136 = vmatmul.mubr.msk.bf16.vlgmr.msra.gmra.mxu1 %vm249_vm1, %v2327_v53 }
0x2a57   :  { %v2405_v50 = vpop.f32.mrf.mxu1 }
0x2a58   :  { %v2406_v4 = vadd.f32 %v2405_v50, %v4316_v21 }
0x2a59   :  { %v3137_v23 = vpop.f32.mrf.mxu1 }
0x2a5a   :  { %v2411_v0 = vadd.f32 %v4256_v18, %v2406_v4 }
0x2a5b   :  { %v2408_v51 = vpop.f32.mrf.mxu1 }
0x2a5c   :  { %3275 = vtanh.f32 %v2411_v0  ;;  %v2615_v32 = vmul.f32 -1.442695, %v2411_v0 }
0x2a5d   :  { %v3138_v57 = vpop.f32.mrf.mxu1 }
0x2a5e   :  { %3277 = vpow2.f32 %v2615_v32 }
0x2a69   :  { %v3276_v27 = vpop.eup %3275 }
0x2a6a   :  { %2421 = vrot.lane.b32.xlu1 %v3276_v27, %s3433_s23 }
0x2a6b   :  { %v3278_v14 = vpop.eup %3277 }
0x2a6c   :  { %v2415_v38 = vadd.f32 1.0, %v3278_v14 }
0x2a6e   :  { %3279 = vrcp.f32 %v2415_v38 }
0x2a7b   :  { %v3280_v63 = vpop.eup %3279 }
0x2a7c   :  { %v2419_v21 = vmul.f32 %v3280_v63, %v4262_v15 }
0x2adc   :  { %v2422_v34 = vpop.permute.xlu1 %2421 }
0x2add   :  { %v2424_v22 = vmul.f32 %v3280_v63, %v2422_v34 }
0x2adf   :  { %2426 = vrot.lane.b32.xlu1 %v2424_v22, %s3434_s24 }
0x2b51   :  { %v2427_v24 = vpop.permute.xlu1 %2426 }
0x2b52   :  { %v2429_v18 = vadd.f32 %v2427_v24, %v2419_v21 }
0x2b54   :  { %3281 = vtanh.f32 %v2429_v18 }
0x2b61   :  { %v3282_v25 = vpop.eup %3281 }
0x2b62   :  { %2432 = vrot.lane.b32.xlu1 %v3282_v25, %s3433_s23 }
0x2bd4   :  { %v2433_v33 = vpop.permute.xlu1 %2432 }
0x2bd5   :  { %v2435_v12 = vmul.f32 %v3280_v63, %v2433_v33 }
0x2bd7   :  { %v2436_v10 = vpack.c.bf16 %v2435_v12, %v2435_v12  ;;  %2486 = vrot.lane.b32.xlu1 %v2435_v12, %s3434_s24 }
0x2bd9   :  { %2438 = vrot.lane.b32.xlu0 %v2436_v10, %s3434_s24 }
0x2bdd   :  { %2492 = vrot.lane.b32.xlu0 %v2429_v18, %s3436_s12 }
0x2c49   :  { %v2487_v20 = vpop.permute.xlu1 %2486 }
0x2c4a   :  { %2490 = vst.msk [vmem:[#allocation8] sm:$0xf] %vm2489_vm0, %v2487_v20 }
0x2c4b   :  { %v2439_v1 = vpop.permute.xlu0 %2438 }
0x2c4c   :  { %3144 = vmatmul.mubr.msk.bf16.vlgmr.msra.gmra.mxu0 %vm249_vm1, %v2439_v1 }
0x2c4f   :  { %v2493_v15 = vpop.permute.xlu0 %2492 }
0x2c50   :  { %2495 = vst.msk [vmem:[#allocation10] sm:$0xf] %vm2489_vm0, %v2493_v15 }
0x2c51   :  { %3365 = shalt.err (!%p3362_p0)
}
0x2c52   :  { %2517 = dma.vmem_to_hbm [thread:$0]  %s2515_s18, 64, %s4386_s15, [#allocation9]  }
0x2c53   :  { %s3438_s19 = smov [#allocation10]  }
0x2c54   :  { %s2524_s6 = sshll.u32 %s3438_s19, 4  ;;  %s2525_s6 = int_to_ptr.vmem [resolvable:$true] %s2524_s6 }
0x2c55   :  { %s3374_s20 = scalar_lea.vmem %s2525_s6, 64  ;;  %p3379_p2 = scmp.lt.s32.totalorder %s2525_s6, %s2525_s6 }
0x2c56   :  { %p3375_p1 = scmp.ne.s32.totalorder %s2525_s6, %s3374_s20  ;;  %p3380_p3 = scmp.lt.s32.totalorder %s3374_s20, %s3374_s20 }
0x2c58   :  { %p3381_p4 = por %p3380_p3, %p3379_p2 }
0x2c5a   :  { %p3382_p5 = pnand %p3381_p4, %p3375_p1 }
0x2c5c   :  { %3385 = shalt.err (!%p3382_p5)
}
0x2c5d   :  { %2527 = dma.vmem_to_hbm [thread:$0]  %s2525_s6, 64, %s4387_s16, [#allocation9]  }
0x2c5e   :  { %s3439_s22 = smov [#allocation7]  }
0x2c5f   :  { %s2501_s25 = sshll.u32 %s3439_s22, 4  ;;  %s2502_s25 = int_to_ptr.vmem [resolvable:$true] %s2501_s25 }
0x2c60   :  { %s3394_s15 = scalar_lea.vmem %s2502_s25, 320  ;;  %p3399_p7 = scmp.lt.s32.totalorder %s2502_s25, %s2502_s25 }
0x2c61   :  { %p3395_p6 = scmp.ne.s32.totalorder %s2502_s25, %s3394_s15  ;;  %p3400_p8 = scmp.lt.s32.totalorder %s3394_s15, %s3394_s15 }
0x2c63   :  { %p3401_p9 = por %p3400_p8, %p3399_p7 }
0x2c65   :  { %p3402_p10 = pnand %p3401_p9, %p3395_p6 }
0x2d0c   :  { %v2477_v2 = vpop.f32.mrf.mxu0 }
0x2d0d   :  { %v2478_v3 = vadd.f32 %v4284_v62, %v2477_v2 }
0x2d0e   :  { %v3145_v59 = vpop.f32.mrf.mxu0 }
0x2d0f   :  { %2484 = vst [vmem:[#allocation7 + $0x10] sm:$0xf] %v2478_v3 }
0x2d10   :  { %v2480_v11 = vpop.f32.mrf.mxu0 }
0x2d11   :  { %3405 = shalt.err (!%p3402_p10)
}
0x2d12   :  { %s3440_s3 = smov 4   ;;  %v3146_v35 = vpop.f32.mrf.mxu0 }
0x2d13   :  { %2507 = dma.vmem_to_hbm [thread:$0]  %s2502_s25, 320, %s4385_s14, [#allocation4], %s3433_s23, %s3433_s23, %s3440_s3  }
0x2d14   :  { %3418 = dma.done.wait [#allocation4], 320  }
0x2d15   :  { %3419 = vsyncadd [#allocation4], 4294966976 }
0x2d16   :  { %3420 = dma.done.wait [#allocation9], 128  }
0x2d17   :  { %3421 = vsyncadd [#allocation9], 4294967168 }
0x2d18   :  { %2537 = vsyncpa [#allocation3], 1 }
0x2d19   :  { %2538 = vsyncpa [#allocation6], 1 }
0x2d1a   :  { %2539 = vsyncpa [#allocation4], 1 }
0x2d1b   :  { %2540 = vsyncpa [#allocation9], 1 }

</bundles_post_ra>
